<compile_context>
chip_gen: v6e
topology: v6e:2x2x1
jax: 0.10.0
libtpu: 0.0.40
codegen_flags: <defaults>
</compile_context>

<pallas_src>
import functools

import jax
import jax.numpy as jnp
from jax import lax
from jax.experimental import pallas as pl
from jax.experimental.pallas import tpu as pltpu


def _gru_decoder_kernel(tok_ref, h0_ref, emb_ref, wih_ref, whh_ref, bgi_ref, bhn_ref,
                        wfc_ref, bfc_ref, pred_ref, hid_ref, hs_scr, *, B, S, H):
    """Single-invocation GRU decoder.

    tok_ref : (S*B, 1) int32, time-major token ids (row = t*B + b)
    h0_ref  : (1, B, H)      initial hidden
    emb_ref : (O, E)         embedding table
    wih_ref : (E, 3H)        W_ih^T
    whh_ref : (H, 3H)        W_hh^T
    bgi_ref : (1, 3H)        [b_ir+b_hr, b_iz+b_hz, b_in]
    bhn_ref : (1, H)         b_hn
    wfc_ref : (H, O)         W_fc^T
    bfc_ref : (1, O)         b_fc
    pred_ref: (B, S, O)      output logits
    hid_ref : (1, B, H)      final hidden
    hs_scr  : (B, S, H)      VMEM scratch for all per-step hidden states
    """
    vocab = emb_ref.shape[0]

    # ---- Hoisted (once, not per timestep) -------------------------------------------------
    # Embedding gather via one-hot matmul (exact in f32) + input projection for ALL timesteps.
    tok = tok_ref[...]                                               # (S*B, 1) int32
    onehot = (tok == lax.broadcasted_iota(jnp.int32, (S * B, vocab), 1)).astype(jnp.float32)
    x_all = jnp.dot(onehot, emb_ref[...], preferred_element_type=jnp.float32)      # (S*B, E)
    gi_all = jnp.dot(x_all, wih_ref[...], preferred_element_type=jnp.float32) + bgi_ref[...]
    #                                                                 # (S*B, 3H), time-major

    whh = whh_ref[...]                                               # (H, 3H)
    b_hn = bhn_ref[...]                                              # (1, H)
    h = h0_ref[0]                                                    # (B, H)

    # ---- Recurrence: static unroll (S is small & static), h carried in vregs ---------------
    for t in range(S):
        gi = gi_all[t * B:(t + 1) * B, :]                            # (B, 3H)
        gh = jnp.dot(h, whh, preferred_element_type=jnp.float32)     # (B, 3H)
        rz = jax.nn.sigmoid(gi[:, :2 * H] + gh[:, :2 * H])           # (B, 2H)
        r = rz[:, :H]
        z = rz[:, H:]
        n = jnp.tanh(gi[:, 2 * H:] + r * (gh[:, 2 * H:] + b_hn))     # (B, H)
        h = (1.0 - z) * n + z * h
        hs_scr[:, pl.ds(t, 1), :] = h[:, None, :]                    # stash h_t

    # ---- Finalize: hidden written once, FC hoisted out of the loop -------------------------
    hid_ref[0] = h

    wfc = wfc_ref[...]                                               # (H, O)
    bfc = bfc_ref[...]                                               # (1, O)
    for b in range(B):                                               # B dense (S,H)@(H,O) matmuls
        pred_ref[b] = jnp.dot(hs_scr[b], wfc, preferred_element_type=jnp.float32) + bfc


@jax.jit
def decoder_forward(x_tokens, hidden0, params):
    """x_tokens: (B, S) int32, hidden0: (1, B, H) f32 -> (pred (B,S,O), hidden (1,B,H))."""
    emb_table = params["embedding"]          # (O, E)
    w_ih = params["w_ih"]                    # (3H, E)
    w_hh = params["w_hh"]                    # (3H, H)
    b_ih = params["b_ih"]                    # (3H,)
    b_hh = params["b_hh"]                    # (3H,)
    w_fc = params["w_fc"]                    # (O, H)
    b_fc = params["b_fc"]                    # (O,)

    B, S = x_tokens.shape
    O, E = emb_table.shape
    H = w_hh.shape[1]

    # Weight-only / tiny glue (no activation-sized HBM round trips).
    tok_tm = x_tokens.T.reshape(S * B, 1).astype(jnp.int32)          # 64 B, time-major rows
    wih_t = w_ih.T                                                   # (E, 3H)
    whh_t = w_hh.T                                                   # (H, 3H)
    wfc_t = w_fc.T                                                   # (H, O)
    bgi = jnp.concatenate([b_ih[:2 * H] + b_hh[:2 * H], b_ih[2 * H:]]).reshape(1, 3 * H)
    bhn = b_hh[2 * H:].reshape(1, H)
    bfc = b_fc.reshape(1, O)

    kernel = functools.partial(_gru_decoder_kernel, B=B, S=S, H=H)

    pred, hid = pl.pallas_call(
        kernel,
        out_shape=(
            jax.ShapeDtypeStruct((B, S, O), jnp.float32),
            jax.ShapeDtypeStruct((1, B, H), jnp.float32),
        ),
        grid_spec=pltpu.PrefetchScalarGridSpec(
            num_scalar_prefetch=0,
            grid=(1,),                                               # single invocation
            in_specs=[
                pl.BlockSpec((S * B, 1), lambda i: (0, 0)),          # tokens (time-major)
                pl.BlockSpec((1, B, H), lambda i: (0, 0, 0)),        # h0
                pl.BlockSpec((O, E), lambda i: (0, 0)),              # embedding table
                pl.BlockSpec((E, 3 * H), lambda i: (0, 0)),          # W_ih^T
                pl.BlockSpec((H, 3 * H), lambda i: (0, 0)),          # W_hh^T
                pl.BlockSpec((1, 3 * H), lambda i: (0, 0)),          # combined input bias
                pl.BlockSpec((1, H), lambda i: (0, 0)),              # b_hn
                pl.BlockSpec((H, O), lambda i: (0, 0)),              # W_fc^T
                pl.BlockSpec((1, O), lambda i: (0, 0)),              # b_fc
            ],
            out_specs=[
                pl.BlockSpec((B, S, O), lambda i: (0, 0, 0)),        # prediction, batch-first
                pl.BlockSpec((1, B, H), lambda i: (0, 0, 0)),        # final hidden
            ],
            scratch_shapes=[pltpu.VMEM((B, S, H), jnp.float32)],     # per-step hidden states
        ),
        compiler_params=pltpu.CompilerParams(
            dimension_semantics=("arbitrary",)),
    )(tok_tm, hidden0, emb_table, wih_t, whh_t, bgi, bhn, wfc_t, bfc)

    return pred, hid


def reference_forward(x_tokens, hidden0, params):
    """Pure-JAX reference (matches PyTorch GRU/Linear semantics)."""
    emb = jnp.take(params["embedding"], x_tokens, axis=0)            # (B, S, E)
    H = params["w_hh"].shape[1]

    def step(h, x_t):
        gi = x_t @ params["w_ih"].T + params["b_ih"]
        gh = h @ params["w_hh"].T + params["b_hh"]
        r = jax.nn.sigmoid(gi[:, :H] + gh[:, :H])
        z = jax.nn.sigmoid(gi[:, H:2 * H] + gh[:, H:2 * H])
        n = jnp.tanh(gi[:, 2 * H:] + r * gh[:, 2 * H:])
        h_new = (1.0 - z) * n + z * h
        return h_new, h_new

    h_final, outs = jax.lax.scan(step, hidden0[0], jnp.transpose(emb, (1, 0, 2)))
    outs = jnp.transpose(outs, (1, 0, 2))                            # (B, S, H)
    pred = outs @ params["w_fc"].T + params["b_fc"]
    return pred, h_final[None]


def init_params(key, output_size, embedding_size, hidden_size):
    ks = jax.random.split(key, 7)
    scale = 1.0 / jnp.sqrt(hidden_size)
    return {
        "embedding": jax.random.normal(ks[0], (output_size, embedding_size), jnp.float32),
        "w_ih": jax.random.uniform(ks[1], (3 * hidden_size, embedding_size),
                                   jnp.float32, -scale, scale),
        "w_hh": jax.random.uniform(ks[2], (3 * hidden_size, hidden_size),
                                   jnp.float32, -scale, scale),
        "b_ih": jax.random.uniform(ks[3], (3 * hidden_size,), jnp.float32, -scale, scale),
        "b_hh": jax.random.uniform(ks[4], (3 * hidden_size,), jnp.float32, -scale, scale),
        "w_fc": jax.random.uniform(ks[5], (output_size, hidden_size),
                                   jnp.float32, -scale, scale),
        "b_fc": jax.random.uniform(ks[6], (output_size,), jnp.float32, -scale, scale),
    }


if __name__ == "__main__":
    # Small shapes: vocab(output_size)=32, embedding=16, hidden=32, num_layers=1,
    # batch=2, seq=8, cell_type='GRU', dropout=0.0.
    OUTPUT_SIZE, EMB, HID = 32, 16, 32
    B, S = 2, 8

    key = jax.random.PRNGKey(0)
    k_par, k_tok, k_hid = jax.random.split(key, 3)

    params = init_params(k_par, OUTPUT_SIZE, EMB, HID)
    x = jax.random.randint(k_tok, (B, S), 0, OUTPUT_SIZE, dtype=jnp.int32)
    h0 = jax.random.normal(k_hid, (1, B, HID), jnp.float32)

    pred, hid = decoder_forward(x, h0, params)
    pred = jax.block_until_ready(pred)
    hid = jax.block_until_ready(hid)

    pred_ref, hid_ref = reference_forward(x, h0, params)
    assert pred.shape == (B, S, OUTPUT_SIZE) and hid.shape == (1, B, HID)
    assert jnp.allclose(pred, pred_ref, atol=1e-4, rtol=1e-4)
    assert jnp.allclose(hid, hid_ref, atol=1e-4, rtol=1e-4)

    print("KERNEL_OK")
</pallas_src>

<mosaic_0001>
module attributes {stable_mosaic.version = 11 : i64} {
  func.func @_gru_decoder_kernel(%arg0: i32, %arg1: memref<16x1xi32, #tpu.memory_space<vmem>>, %arg2: memref<1x2x32xf32, #tpu.memory_space<vmem>>, %arg3: memref<32x16xf32, #tpu.memory_space<vmem>>, %arg4: memref<16x96xf32, #tpu.memory_space<vmem>>, %arg5: memref<32x96xf32, #tpu.memory_space<vmem>>, %arg6: memref<1x96xf32, #tpu.memory_space<vmem>>, %arg7: memref<1x32xf32, #tpu.memory_space<vmem>>, %arg8: memref<32x32xf32, #tpu.memory_space<vmem>>, %arg9: memref<1x32xf32, #tpu.memory_space<vmem>>, %arg10: memref<2x8x32xf32, #tpu.memory_space<vmem>>, %arg11: memref<1x2x32xf32, #tpu.memory_space<vmem>>, %arg12: memref<2x8x32xf32, #tpu.memory_space<vmem>>) attributes {dimension_semantics = [#tpu.dimension_semantics<arbitrary>], iteration_bounds = array<i64: 1>, scalar_prefetch = 0 : i64, scratch_operands = 1 : i64, tpu.core_type = #tpu.core_type<tc>, window_params = [{pipeline_mode = #tpu.pipeline_mode<synchronous>, transform_indices = @transform_0, window_bounds = array<i64: 16, 1>}, {pipeline_mode = #tpu.pipeline_mode<synchronous>, transform_indices = @transform_1, window_bounds = array<i64: 1, 2, 32>}, {pipeline_mode = #tpu.pipeline_mode<synchronous>, transform_indices = @transform_2, window_bounds = array<i64: 32, 16>}, {pipeline_mode = #tpu.pipeline_mode<synchronous>, transform_indices = @transform_3, window_bounds = array<i64: 16, 96>}, {pipeline_mode = #tpu.pipeline_mode<synchronous>, transform_indices = @transform_4, window_bounds = array<i64: 32, 96>}, {pipeline_mode = #tpu.pipeline_mode<synchronous>, transform_indices = @transform_5, window_bounds = array<i64: 1, 96>}, {pipeline_mode = #tpu.pipeline_mode<synchronous>, transform_indices = @transform_6, window_bounds = array<i64: 1, 32>}, {pipeline_mode = #tpu.pipeline_mode<synchronous>, transform_indices = @transform_7, window_bounds = array<i64: 32, 32>}, {pipeline_mode = #tpu.pipeline_mode<synchronous>, transform_indices = @transform_8, window_bounds = array<i64: 1, 32>}, {pipeline_mode = #tpu.pipeline_mode<synchronous>, transform_indices = @transform_9, window_bounds = array<i64: 2, 8, 32>}, {pipeline_mode = #tpu.pipeline_mode<synchronous>, transform_indices = @transform_10, window_bounds = array<i64: 1, 2, 32>}]} {
    %c0 = arith.constant 0 : index
    %c0_0 = arith.constant 0 : index
    %0 = vector.load %arg1[%c0, %c0_0] : memref<16x1xi32, #tpu.memory_space<vmem>>, vector<16x1xi32>
    %1 = tpu.iota {dimensions = array<i32: 1>} : vector<16x32xi32>
    %2 = vector.broadcast %0 : vector<16x1xi32> to vector<16x32xi32>
    %3 = arith.cmpi eq, %2, %1 : vector<16x32xi32>
    %4 = arith.extui %3 : vector<16x32xi1> to vector<16x32xi32>
    %5 = arith.sitofp %4 : vector<16x32xi32> to vector<16x32xf32>
    %c0_1 = arith.constant 0 : index
    %c0_2 = arith.constant 0 : index
    %6 = vector.load %arg3[%c0_1, %c0_2] : memref<32x16xf32, #tpu.memory_space<vmem>>, vector<32x16xf32>
    %cst = arith.constant dense<0.000000e+00> : vector<16x16xf32>
    %7 = tpu.matmul %5, %6, %cst {dimension_numbers = #tpu.dot_dimension_numbers<[1], [0], [0], [1], [0, 0, 1, 1], [], []>} : vector<16x32xf32>, vector<32x16xf32>, vector<16x16xf32> -> vector<16x16xf32>
    %c0_3 = arith.constant 0 : index
    %c0_4 = arith.constant 0 : index
    %8 = vector.load %arg4[%c0_3, %c0_4] : memref<16x96xf32, #tpu.memory_space<vmem>>, vector<16x96xf32>
    %cst_5 = arith.constant dense<0.000000e+00> : vector<16x96xf32>
    %9 = tpu.matmul %7, %8, %cst_5 {dimension_numbers = #tpu.dot_dimension_numbers<[1], [0], [0], [1], [0, 0, 1, 1], [], []>} : vector<16x16xf32>, vector<16x96xf32>, vector<16x96xf32> -> vector<16x96xf32>
    %c0_6 = arith.constant 0 : index
    %c0_7 = arith.constant 0 : index
    %10 = vector.load %arg6[%c0_6, %c0_7] : memref<1x96xf32, #tpu.memory_space<vmem>>, vector<1x96xf32>
    %11 = vector.broadcast %10 : vector<1x96xf32> to vector<16x96xf32>
    %12 = arith.addf %9, %11 : vector<16x96xf32>
    %c0_8 = arith.constant 0 : index
    %c0_9 = arith.constant 0 : index
    %13 = vector.load %arg5[%c0_8, %c0_9] : memref<32x96xf32, #tpu.memory_space<vmem>>, vector<32x96xf32>
    %c0_10 = arith.constant 0 : index
    %c0_11 = arith.constant 0 : index
    %14 = vector.load %arg7[%c0_10, %c0_11] : memref<1x32xf32, #tpu.memory_space<vmem>>, vector<1x32xf32>
    %c0_12 = arith.constant 0 : index
    %c0_13 = arith.constant 0 : index
    %c0_14 = arith.constant 0 : index
    %15 = vector.load %arg2[%c0_12, %c0_13, %c0_14] : memref<1x2x32xf32, #tpu.memory_space<vmem>>, vector<1x2x32xf32>
    %16 = vector.shape_cast %15 : vector<1x2x32xf32> to vector<2x32xf32>
    %17 = vector.extract_strided_slice %12 {offsets = [0, 0], sizes = [2, 96], strides = [1, 1]} : vector<16x96xf32> to vector<2x96xf32>
    %cst_15 = arith.constant dense<0.000000e+00> : vector<2x96xf32>
    %18 = tpu.matmul %16, %13, %cst_15 {dimension_numbers = #tpu.dot_dimension_numbers<[1], [0], [0], [1], [0, 0, 1, 1], [], []>} : vector<2x32xf32>, vector<32x96xf32>, vector<2x96xf32> -> vector<2x96xf32>
    %19 = vector.extract_strided_slice %17 {offsets = [0, 0], sizes = [2, 64], strides = [1, 1]} : vector<2x96xf32> to vector<2x64xf32>
    %20 = vector.extract_strided_slice %18 {offsets = [0, 0], sizes = [2, 64], strides = [1, 1]} : vector<2x96xf32> to vector<2x64xf32>
    %21 = arith.addf %19, %20 : vector<2x64xf32>
    %22 = arith.negf %21 : vector<2x64xf32>
    %23 = math.exp %22 : vector<2x64xf32>
    %cst_16 = arith.constant 1.000000e+00 : f32
    %24 = vector.broadcast %cst_16 : f32 to vector<2x64xf32>
    %25 = arith.addf %24, %23 : vector<2x64xf32>
    %26 = arith.divf %24, %25 : vector<2x64xf32>
    %27 = vector.extract_strided_slice %26 {offsets = [0, 0], sizes = [2, 32], strides = [1, 1]} : vector<2x64xf32> to vector<2x32xf32>
    %28 = vector.extract_strided_slice %26 {offsets = [0, 32], sizes = [2, 32], strides = [1, 1]} : vector<2x64xf32> to vector<2x32xf32>
    %29 = vector.extract_strided_slice %17 {offsets = [0, 64], sizes = [2, 32], strides = [1, 1]} : vector<2x96xf32> to vector<2x32xf32>
    %30 = vector.extract_strided_slice %18 {offsets = [0, 64], sizes = [2, 32], strides = [1, 1]} : vector<2x96xf32> to vector<2x32xf32>
    %31 = vector.broadcast %14 : vector<1x32xf32> to vector<2x32xf32>
    %32 = arith.addf %30, %31 : vector<2x32xf32>
    %33 = arith.mulf %27, %32 : vector<2x32xf32>
    %34 = arith.addf %29, %33 : vector<2x32xf32>
    %35 = math.tanh %34 : vector<2x32xf32>
    %cst_17 = arith.constant 1.000000e+00 : f32
    %36 = vector.broadcast %cst_17 : f32 to vector<2x32xf32>
    %37 = arith.subf %36, %28 : vector<2x32xf32>
    %38 = arith.mulf %37, %35 : vector<2x32xf32>
    %39 = arith.mulf %28, %16 : vector<2x32xf32>
    %40 = arith.addf %38, %39 : vector<2x32xf32>
    %41 = vector.shape_cast %40 : vector<2x32xf32> to vector<2x1x32xf32>
    %c0_18 = arith.constant 0 : index
    %c0_19 = arith.constant 0 : index
    %c0_20 = arith.constant 0 : index
    %42 = vector.load %arg12[%c0_18, %c0_19, %c0_20] : memref<2x8x32xf32, #tpu.memory_space<vmem>>, vector<2x1x32xf32>
    tpu.vector_store %arg12[%c0_18, %c0_19, %c0_20], %41 {strides = array<i32>} : memref<2x8x32xf32, #tpu.memory_space<vmem>>, vector<2x1x32xf32>,
    %43 = vector.extract_strided_slice %12 {offsets = [2, 0], sizes = [2, 96], strides = [1, 1]} : vector<16x96xf32> to vector<2x96xf32>
    %cst_21 = arith.constant dense<0.000000e+00> : vector<2x96xf32>
    %44 = tpu.matmul %40, %13, %cst_21 {dimension_numbers = #tpu.dot_dimension_numbers<[1], [0], [0], [1], [0, 0, 1, 1], [], []>} : vector<2x32xf32>, vector<32x96xf32>, vector<2x96xf32> -> vector<2x96xf32>
    %45 = vector.extract_strided_slice %43 {offsets = [0, 0], sizes = [2, 64], strides = [1, 1]} : vector<2x96xf32> to vector<2x64xf32>
    %46 = vector.extract_strided_slice %44 {offsets = [0, 0], sizes = [2, 64], strides = [1, 1]} : vector<2x96xf32> to vector<2x64xf32>
    %47 = arith.addf %45, %46 : vector<2x64xf32>
    %48 = arith.negf %47 : vector<2x64xf32>
    %49 = math.exp %48 : vector<2x64xf32>
    %cst_22 = arith.constant 1.000000e+00 : f32
    %50 = vector.broadcast %cst_22 : f32 to vector<2x64xf32>
    %51 = arith.addf %50, %49 : vector<2x64xf32>
    %52 = arith.divf %50, %51 : vector<2x64xf32>
    %53 = vector.extract_strided_slice %52 {offsets = [0, 0], sizes = [2, 32], strides = [1, 1]} : vector<2x64xf32> to vector<2x32xf32>
    %54 = vector.extract_strided_slice %52 {offsets = [0, 32], sizes = [2, 32], strides = [1, 1]} : vector<2x64xf32> to vector<2x32xf32>
    %55 = vector.extract_strided_slice %43 {offsets = [0, 64], sizes = [2, 32], strides = [1, 1]} : vector<2x96xf32> to vector<2x32xf32>
    %56 = vector.extract_strided_slice %44 {offsets = [0, 64], sizes = [2, 32], strides = [1, 1]} : vector<2x96xf32> to vector<2x32xf32>
    %57 = vector.broadcast %14 : vector<1x32xf32> to vector<2x32xf32>
    %58 = arith.addf %56, %57 : vector<2x32xf32>
    %59 = arith.mulf %53, %58 : vector<2x32xf32>
    %60 = arith.addf %55, %59 : vector<2x32xf32>
    %61 = math.tanh %60 : vector<2x32xf32>
    %cst_23 = arith.constant 1.000000e+00 : f32
    %62 = vector.broadcast %cst_23 : f32 to vector<2x32xf32>
    %63 = arith.subf %62, %54 : vector<2x32xf32>
    %64 = arith.mulf %63, %61 : vector<2x32xf32>
    %65 = arith.mulf %54, %40 : vector<2x32xf32>
    %66 = arith.addf %64, %65 : vector<2x32xf32>
    %67 = vector.shape_cast %66 : vector<2x32xf32> to vector<2x1x32xf32>
    %c0_24 = arith.constant 0 : index
    %c1 = arith.constant 1 : index
    %c0_25 = arith.constant 0 : index
    %68 = vector.load %arg12[%c0_24, %c1, %c0_25] : memref<2x8x32xf32, #tpu.memory_space<vmem>>, vector<2x1x32xf32>
    tpu.vector_store %arg12[%c0_24, %c1, %c0_25], %67 {strides = array<i32>} : memref<2x8x32xf32, #tpu.memory_space<vmem>>, vector<2x1x32xf32>,
    %69 = vector.extract_strided_slice %12 {offsets = [4, 0], sizes = [2, 96], strides = [1, 1]} : vector<16x96xf32> to vector<2x96xf32>
    %cst_26 = arith.constant dense<0.000000e+00> : vector<2x96xf32>
    %70 = tpu.matmul %66, %13, %cst_26 {dimension_numbers = #tpu.dot_dimension_numbers<[1], [0], [0], [1], [0, 0, 1, 1], [], []>} : vector<2x32xf32>, vector<32x96xf32>, vector<2x96xf32> -> vector<2x96xf32>
    %71 = vector.extract_strided_slice %69 {offsets = [0, 0], sizes = [2, 64], strides = [1, 1]} : vector<2x96xf32> to vector<2x64xf32>
    %72 = vector.extract_strided_slice %70 {offsets = [0, 0], sizes = [2, 64], strides = [1, 1]} : vector<2x96xf32> to vector<2x64xf32>
    %73 = arith.addf %71, %72 : vector<2x64xf32>
    %74 = arith.negf %73 : vector<2x64xf32>
    %75 = math.exp %74 : vector<2x64xf32>
    %cst_27 = arith.constant 1.000000e+00 : f32
    %76 = vector.broadcast %cst_27 : f32 to vector<2x64xf32>
    %77 = arith.addf %76, %75 : vector<2x64xf32>
    %78 = arith.divf %76, %77 : vector<2x64xf32>
    %79 = vector.extract_strided_slice %78 {offsets = [0, 0], sizes = [2, 32], strides = [1, 1]} : vector<2x64xf32> to vector<2x32xf32>
    %80 = vector.extract_strided_slice %78 {offsets = [0, 32], sizes = [2, 32], strides = [1, 1]} : vector<2x64xf32> to vector<2x32xf32>
    %81 = vector.extract_strided_slice %69 {offsets = [0, 64], sizes = [2, 32], strides = [1, 1]} : vector<2x96xf32> to vector<2x32xf32>
    %82 = vector.extract_strided_slice %70 {offsets = [0, 64], sizes = [2, 32], strides = [1, 1]} : vector<2x96xf32> to vector<2x32xf32>
    %83 = vector.broadcast %14 : vector<1x32xf32> to vector<2x32xf32>
    %84 = arith.addf %82, %83 : vector<2x32xf32>
    %85 = arith.mulf %79, %84 : vector<2x32xf32>
    %86 = arith.addf %81, %85 : vector<2x32xf32>
    %87 = math.tanh %86 : vector<2x32xf32>
    %cst_28 = arith.constant 1.000000e+00 : f32
    %88 = vector.broadcast %cst_28 : f32 to vector<2x32xf32>
    %89 = arith.subf %88, %80 : vector<2x32xf32>
    %90 = arith.mulf %89, %87 : vector<2x32xf32>
    %91 = arith.mulf %80, %66 : vector<2x32xf32>
    %92 = arith.addf %90, %91 : vector<2x32xf32>
    %93 = vector.shape_cast %92 : vector<2x32xf32> to vector<2x1x32xf32>
    %c0_29 = arith.constant 0 : index
    %c2 = arith.constant 2 : index
    %c0_30 = arith.constant 0 : index
    %94 = vector.load %arg12[%c0_29, %c2, %c0_30] : memref<2x8x32xf32, #tpu.memory_space<vmem>>, vector<2x1x32xf32>
    tpu.vector_store %arg12[%c0_29, %c2, %c0_30], %93 {strides = array<i32>} : memref<2x8x32xf32, #tpu.memory_space<vmem>>, vector<2x1x32xf32>,
    %95 = vector.extract_strided_slice %12 {offsets = [6, 0], sizes = [2, 96], strides = [1, 1]} : vector<16x96xf32> to vector<2x96xf32>
    %cst_31 = arith.constant dense<0.000000e+00> : vector<2x96xf32>
    %96 = tpu.matmul %92, %13, %cst_31 {dimension_numbers = #tpu.dot_dimension_numbers<[1], [0], [0], [1], [0, 0, 1, 1], [], []>} : vector<2x32xf32>, vector<32x96xf32>, vector<2x96xf32> -> vector<2x96xf32>
    %97 = vector.extract_strided_slice %95 {offsets = [0, 0], sizes = [2, 64], strides = [1, 1]} : vector<2x96xf32> to vector<2x64xf32>
    %98 = vector.extract_strided_slice %96 {offsets = [0, 0], sizes = [2, 64], strides = [1, 1]} : vector<2x96xf32> to vector<2x64xf32>
    %99 = arith.addf %97, %98 : vector<2x64xf32>
    %100 = arith.negf %99 : vector<2x64xf32>
    %101 = math.exp %100 : vector<2x64xf32>
    %cst_32 = arith.constant 1.000000e+00 : f32
    %102 = vector.broadcast %cst_32 : f32 to vector<2x64xf32>
    %103 = arith.addf %102, %101 : vector<2x64xf32>
    %104 = arith.divf %102, %103 : vector<2x64xf32>
    %105 = vector.extract_strided_slice %104 {offsets = [0, 0], sizes = [2, 32], strides = [1, 1]} : vector<2x64xf32> to vector<2x32xf32>
    %106 = vector.extract_strided_slice %104 {offsets = [0, 32], sizes = [2, 32], strides = [1, 1]} : vector<2x64xf32> to vector<2x32xf32>
    %107 = vector.extract_strided_slice %95 {offsets = [0, 64], sizes = [2, 32], strides = [1, 1]} : vector<2x96xf32> to vector<2x32xf32>
    %108 = vector.extract_strided_slice %96 {offsets = [0, 64], sizes = [2, 32], strides = [1, 1]} : vector<2x96xf32> to vector<2x32xf32>
    %109 = vector.broadcast %14 : vector<1x32xf32> to vector<2x32xf32>
    %110 = arith.addf %108, %109 : vector<2x32xf32>
    %111 = arith.mulf %105, %110 : vector<2x32xf32>
    %112 = arith.addf %107, %111 : vector<2x32xf32>
    %113 = math.tanh %112 : vector<2x32xf32>
    %cst_33 = arith.constant 1.000000e+00 : f32
    %114 = vector.broadcast %cst_33 : f32 to vector<2x32xf32>
    %115 = arith.subf %114, %106 : vector<2x32xf32>
    %116 = arith.mulf %115, %113 : vector<2x32xf32>
    %117 = arith.mulf %106, %92 : vector<2x32xf32>
    %118 = arith.addf %116, %117 : vector<2x32xf32>
    %119 = vector.shape_cast %118 : vector<2x32xf32> to vector<2x1x32xf32>
    %c0_34 = arith.constant 0 : index
    %c3 = arith.constant 3 : index
    %c0_35 = arith.constant 0 : index
    %120 = vector.load %arg12[%c0_34, %c3, %c0_35] : memref<2x8x32xf32, #tpu.memory_space<vmem>>, vector<2x1x32xf32>
    tpu.vector_store %arg12[%c0_34, %c3, %c0_35], %119 {strides = array<i32>} : memref<2x8x32xf32, #tpu.memory_space<vmem>>, vector<2x1x32xf32>,
    %121 = vector.extract_strided_slice %12 {offsets = [8, 0], sizes = [2, 96], strides = [1, 1]} : vector<16x96xf32> to vector<2x96xf32>
    %cst_36 = arith.constant dense<0.000000e+00> : vector<2x96xf32>
    %122 = tpu.matmul %118, %13, %cst_36 {dimension_numbers = #tpu.dot_dimension_numbers<[1], [0], [0], [1], [0, 0, 1, 1], [], []>} : vector<2x32xf32>, vector<32x96xf32>, vector<2x96xf32> -> vector<2x96xf32>
    %123 = vector.extract_strided_slice %121 {offsets = [0, 0], sizes = [2, 64], strides = [1, 1]} : vector<2x96xf32> to vector<2x64xf32>
    %124 = vector.extract_strided_slice %122 {offsets = [0, 0], sizes = [2, 64], strides = [1, 1]} : vector<2x96xf32> to vector<2x64xf32>
    %125 = arith.addf %123, %124 : vector<2x64xf32>
    %126 = arith.negf %125 : vector<2x64xf32>
    %127 = math.exp %126 : vector<2x64xf32>
    %cst_37 = arith.constant 1.000000e+00 : f32
    %128 = vector.broadcast %cst_37 : f32 to vector<2x64xf32>
    %129 = arith.addf %128, %127 : vector<2x64xf32>
    %130 = arith.divf %128, %129 : vector<2x64xf32>
    %131 = vector.extract_strided_slice %130 {offsets = [0, 0], sizes = [2, 32], strides = [1, 1]} : vector<2x64xf32> to vector<2x32xf32>
    %132 = vector.extract_strided_slice %130 {offsets = [0, 32], sizes = [2, 32], strides = [1, 1]} : vector<2x64xf32> to vector<2x32xf32>
    %133 = vector.extract_strided_slice %121 {offsets = [0, 64], sizes = [2, 32], strides = [1, 1]} : vector<2x96xf32> to vector<2x32xf32>
    %134 = vector.extract_strided_slice %122 {offsets = [0, 64], sizes = [2, 32], strides = [1, 1]} : vector<2x96xf32> to vector<2x32xf32>
    %135 = vector.broadcast %14 : vector<1x32xf32> to vector<2x32xf32>
    %136 = arith.addf %134, %135 : vector<2x32xf32>
    %137 = arith.mulf %131, %136 : vector<2x32xf32>
    %138 = arith.addf %133, %137 : vector<2x32xf32>
    %139 = math.tanh %138 : vector<2x32xf32>
    %cst_38 = arith.constant 1.000000e+00 : f32
    %140 = vector.broadcast %cst_38 : f32 to vector<2x32xf32>
    %141 = arith.subf %140, %132 : vector<2x32xf32>
    %142 = arith.mulf %141, %139 : vector<2x32xf32>
    %143 = arith.mulf %132, %118 : vector<2x32xf32>
    %144 = arith.addf %142, %143 : vector<2x32xf32>
    %145 = vector.shape_cast %144 : vector<2x32xf32> to vector<2x1x32xf32>
    %c0_39 = arith.constant 0 : index
    %c4 = arith.constant 4 : index
    %c0_40 = arith.constant 0 : index
    %146 = vector.load %arg12[%c0_39, %c4, %c0_40] : memref<2x8x32xf32, #tpu.memory_space<vmem>>, vector<2x1x32xf32>
    tpu.vector_store %arg12[%c0_39, %c4, %c0_40], %145 {strides = array<i32>} : memref<2x8x32xf32, #tpu.memory_space<vmem>>, vector<2x1x32xf32>,
    %147 = vector.extract_strided_slice %12 {offsets = [10, 0], sizes = [2, 96], strides = [1, 1]} : vector<16x96xf32> to vector<2x96xf32>
    %cst_41 = arith.constant dense<0.000000e+00> : vector<2x96xf32>
    %148 = tpu.matmul %144, %13, %cst_41 {dimension_numbers = #tpu.dot_dimension_numbers<[1], [0], [0], [1], [0, 0, 1, 1], [], []>} : vector<2x32xf32>, vector<32x96xf32>, vector<2x96xf32> -> vector<2x96xf32>
    %149 = vector.extract_strided_slice %147 {offsets = [0, 0], sizes = [2, 64], strides = [1, 1]} : vector<2x96xf32> to vector<2x64xf32>
    %150 = vector.extract_strided_slice %148 {offsets = [0, 0], sizes = [2, 64], strides = [1, 1]} : vector<2x96xf32> to vector<2x64xf32>
    %151 = arith.addf %149, %150 : vector<2x64xf32>
    %152 = arith.negf %151 : vector<2x64xf32>
    %153 = math.exp %152 : vector<2x64xf32>
    %cst_42 = arith.constant 1.000000e+00 : f32
    %154 = vector.broadcast %cst_42 : f32 to vector<2x64xf32>
    %155 = arith.addf %154, %153 : vector<2x64xf32>
    %156 = arith.divf %154, %155 : vector<2x64xf32>
    %157 = vector.extract_strided_slice %156 {offsets = [0, 0], sizes = [2, 32], strides = [1, 1]} : vector<2x64xf32> to vector<2x32xf32>
    %158 = vector.extract_strided_slice %156 {offsets = [0, 32], sizes = [2, 32], strides = [1, 1]} : vector<2x64xf32> to vector<2x32xf32>
    %159 = vector.extract_strided_slice %147 {offsets = [0, 64], sizes = [2, 32], strides = [1, 1]} : vector<2x96xf32> to vector<2x32xf32>
    %160 = vector.extract_strided_slice %148 {offsets = [0, 64], sizes = [2, 32], strides = [1, 1]} : vector<2x96xf32> to vector<2x32xf32>
    %161 = vector.broadcast %14 : vector<1x32xf32> to vector<2x32xf32>
    %162 = arith.addf %160, %161 : vector<2x32xf32>
    %163 = arith.mulf %157, %162 : vector<2x32xf32>
    %164 = arith.addf %159, %163 : vector<2x32xf32>
    %165 = math.tanh %164 : vector<2x32xf32>
    %cst_43 = arith.constant 1.000000e+00 : f32
    %166 = vector.broadcast %cst_43 : f32 to vector<2x32xf32>
    %167 = arith.subf %166, %158 : vector<2x32xf32>
    %168 = arith.mulf %167, %165 : vector<2x32xf32>
    %169 = arith.mulf %158, %144 : vector<2x32xf32>
    %170 = arith.addf %168, %169 : vector<2x32xf32>
    %171 = vector.shape_cast %170 : vector<2x32xf32> to vector<2x1x32xf32>
    %c0_44 = arith.constant 0 : index
    %c5 = arith.constant 5 : index
    %c0_45 = arith.constant 0 : index
    %172 = vector.load %arg12[%c0_44, %c5, %c0_45] : memref<2x8x32xf32, #tpu.memory_space<vmem>>, vector<2x1x32xf32>
    tpu.vector_store %arg12[%c0_44, %c5, %c0_45], %171 {strides = array<i32>} : memref<2x8x32xf32, #tpu.memory_space<vmem>>, vector<2x1x32xf32>,
    %173 = vector.extract_strided_slice %12 {offsets = [12, 0], sizes = [2, 96], strides = [1, 1]} : vector<16x96xf32> to vector<2x96xf32>
    %cst_46 = arith.constant dense<0.000000e+00> : vector<2x96xf32>
    %174 = tpu.matmul %170, %13, %cst_46 {dimension_numbers = #tpu.dot_dimension_numbers<[1], [0], [0], [1], [0, 0, 1, 1], [], []>} : vector<2x32xf32>, vector<32x96xf32>, vector<2x96xf32> -> vector<2x96xf32>
    %175 = vector.extract_strided_slice %173 {offsets = [0, 0], sizes = [2, 64], strides = [1, 1]} : vector<2x96xf32> to vector<2x64xf32>
    %176 = vector.extract_strided_slice %174 {offsets = [0, 0], sizes = [2, 64], strides = [1, 1]} : vector<2x96xf32> to vector<2x64xf32>
    %177 = arith.addf %175, %176 : vector<2x64xf32>
    %178 = arith.negf %177 : vector<2x64xf32>
    %179 = math.exp %178 : vector<2x64xf32>
    %cst_47 = arith.constant 1.000000e+00 : f32
    %180 = vector.broadcast %cst_47 : f32 to vector<2x64xf32>
    %181 = arith.addf %180, %179 : vector<2x64xf32>
    %182 = arith.divf %180, %181 : vector<2x64xf32>
    %183 = vector.extract_strided_slice %182 {offsets = [0, 0], sizes = [2, 32], strides = [1, 1]} : vector<2x64xf32> to vector<2x32xf32>
    %184 = vector.extract_strided_slice %182 {offsets = [0, 32], sizes = [2, 32], strides = [1, 1]} : vector<2x64xf32> to vector<2x32xf32>
    %185 = vector.extract_strided_slice %173 {offsets = [0, 64], sizes = [2, 32], strides = [1, 1]} : vector<2x96xf32> to vector<2x32xf32>
    %186 = vector.extract_strided_slice %174 {offsets = [0, 64], sizes = [2, 32], strides = [1, 1]} : vector<2x96xf32> to vector<2x32xf32>
    %187 = vector.broadcast %14 : vector<1x32xf32> to vector<2x32xf32>
    %188 = arith.addf %186, %187 : vector<2x32xf32>
    %189 = arith.mulf %183, %188 : vector<2x32xf32>
    %190 = arith.addf %185, %189 : vector<2x32xf32>
    %191 = math.tanh %190 : vector<2x32xf32>
    %cst_48 = arith.constant 1.000000e+00 : f32
    %192 = vector.broadcast %cst_48 : f32 to vector<2x32xf32>
    %193 = arith.subf %192, %184 : vector<2x32xf32>
    %194 = arith.mulf %193, %191 : vector<2x32xf32>
    %195 = arith.mulf %184, %170 : vector<2x32xf32>
    %196 = arith.addf %194, %195 : vector<2x32xf32>
    %197 = vector.shape_cast %196 : vector<2x32xf32> to vector<2x1x32xf32>
    %c0_49 = arith.constant 0 : index
    %c6 = arith.constant 6 : index
    %c0_50 = arith.constant 0 : index
    %198 = vector.load %arg12[%c0_49, %c6, %c0_50] : memref<2x8x32xf32, #tpu.memory_space<vmem>>, vector<2x1x32xf32>
    tpu.vector_store %arg12[%c0_49, %c6, %c0_50], %197 {strides = array<i32>} : memref<2x8x32xf32, #tpu.memory_space<vmem>>, vector<2x1x32xf32>,
    %199 = vector.extract_strided_slice %12 {offsets = [14, 0], sizes = [2, 96], strides = [1, 1]} : vector<16x96xf32> to vector<2x96xf32>
    %cst_51 = arith.constant dense<0.000000e+00> : vector<2x96xf32>
    %200 = tpu.matmul %196, %13, %cst_51 {dimension_numbers = #tpu.dot_dimension_numbers<[1], [0], [0], [1], [0, 0, 1, 1], [], []>} : vector<2x32xf32>, vector<32x96xf32>, vector<2x96xf32> -> vector<2x96xf32>
    %201 = vector.extract_strided_slice %199 {offsets = [0, 0], sizes = [2, 64], strides = [1, 1]} : vector<2x96xf32> to vector<2x64xf32>
    %202 = vector.extract_strided_slice %200 {offsets = [0, 0], sizes = [2, 64], strides = [1, 1]} : vector<2x96xf32> to vector<2x64xf32>
    %203 = arith.addf %201, %202 : vector<2x64xf32>
    %204 = arith.negf %203 : vector<2x64xf32>
    %205 = math.exp %204 : vector<2x64xf32>
    %cst_52 = arith.constant 1.000000e+00 : f32
    %206 = vector.broadcast %cst_52 : f32 to vector<2x64xf32>
    %207 = arith.addf %206, %205 : vector<2x64xf32>
    %208 = arith.divf %206, %207 : vector<2x64xf32>
    %209 = vector.extract_strided_slice %208 {offsets = [0, 0], sizes = [2, 32], strides = [1, 1]} : vector<2x64xf32> to vector<2x32xf32>
    %210 = vector.extract_strided_slice %208 {offsets = [0, 32], sizes = [2, 32], strides = [1, 1]} : vector<2x64xf32> to vector<2x32xf32>
    %211 = vector.extract_strided_slice %199 {offsets = [0, 64], sizes = [2, 32], strides = [1, 1]} : vector<2x96xf32> to vector<2x32xf32>
    %212 = vector.extract_strided_slice %200 {offsets = [0, 64], sizes = [2, 32], strides = [1, 1]} : vector<2x96xf32> to vector<2x32xf32>
    %213 = vector.broadcast %14 : vector<1x32xf32> to vector<2x32xf32>
    %214 = arith.addf %212, %213 : vector<2x32xf32>
    %215 = arith.mulf %209, %214 : vector<2x32xf32>
    %216 = arith.addf %211, %215 : vector<2x32xf32>
    %217 = math.tanh %216 : vector<2x32xf32>
    %cst_53 = arith.constant 1.000000e+00 : f32
    %218 = vector.broadcast %cst_53 : f32 to vector<2x32xf32>
    %219 = arith.subf %218, %210 : vector<2x32xf32>
    %220 = arith.mulf %219, %217 : vector<2x32xf32>
    %221 = arith.mulf %210, %196 : vector<2x32xf32>
    %222 = arith.addf %220, %221 : vector<2x32xf32>
    %223 = vector.shape_cast %222 : vector<2x32xf32> to vector<2x1x32xf32>
    %c0_54 = arith.constant 0 : index
    %c7 = arith.constant 7 : index
    %c0_55 = arith.constant 0 : index
    %224 = vector.load %arg12[%c0_54, %c7, %c0_55] : memref<2x8x32xf32, #tpu.memory_space<vmem>>, vector<2x1x32xf32>
    tpu.vector_store %arg12[%c0_54, %c7, %c0_55], %223 {strides = array<i32>} : memref<2x8x32xf32, #tpu.memory_space<vmem>>, vector<2x1x32xf32>,
    %c0_56 = arith.constant 0 : index
    %c0_57 = arith.constant 0 : index
    %c0_58 = arith.constant 0 : index
    %225 = vector.load %arg11[%c0_56, %c0_57, %c0_58] : memref<1x2x32xf32, #tpu.memory_space<vmem>>, vector<1x2x32xf32>
    %226 = vector.shape_cast %225 : vector<1x2x32xf32> to vector<2x32xf32>
    %227 = vector.shape_cast %222 : vector<2x32xf32> to vector<1x2x32xf32>
    tpu.vector_store %arg11[%c0_56, %c0_57, %c0_58], %227 {strides = array<i32>} : memref<1x2x32xf32, #tpu.memory_space<vmem>>, vector<1x2x32xf32>,
    %c0_59 = arith.constant 0 : index
    %c0_60 = arith.constant 0 : index
    %228 = vector.load %arg8[%c0_59, %c0_60] : memref<32x32xf32, #tpu.memory_space<vmem>>, vector<32x32xf32>
    %c0_61 = arith.constant 0 : index
    %c0_62 = arith.constant 0 : index
    %229 = vector.load %arg9[%c0_61, %c0_62] : memref<1x32xf32, #tpu.memory_space<vmem>>, vector<1x32xf32>
    %c0_63 = arith.constant 0 : index
    %c0_64 = arith.constant 0 : index
    %c0_65 = arith.constant 0 : index
    %230 = vector.load %arg12[%c0_63, %c0_64, %c0_65] : memref<2x8x32xf32, #tpu.memory_space<vmem>>, vector<1x8x32xf32>
    %231 = vector.shape_cast %230 : vector<1x8x32xf32> to vector<8x32xf32>
    %cst_66 = arith.constant dense<0.000000e+00> : vector<8x32xf32>
    %232 = tpu.matmul %231, %228, %cst_66 {dimension_numbers = #tpu.dot_dimension_numbers<[1], [0], [0], [1], [0, 0, 1, 1], [], []>} : vector<8x32xf32>, vector<32x32xf32>, vector<8x32xf32> -> vector<8x32xf32>
    %233 = vector.broadcast %229 : vector<1x32xf32> to vector<8x32xf32>
    %234 = arith.addf %232, %233 : vector<8x32xf32>
    %c0_67 = arith.constant 0 : index
    %c0_68 = arith.constant 0 : index
    %c0_69 = arith.constant 0 : index
    %235 = vector.load %arg10[%c0_67, %c0_68, %c0_69] : memref<2x8x32xf32, #tpu.memory_space<vmem>>, vector<1x8x32xf32>
    %236 = vector.shape_cast %235 : vector<1x8x32xf32> to vector<8x32xf32>
    %237 = vector.shape_cast %234 : vector<8x32xf32> to vector<1x8x32xf32>
    tpu.vector_store %arg10[%c0_67, %c0_68, %c0_69], %237 {strides = array<i32>} : memref<2x8x32xf32, #tpu.memory_space<vmem>>, vector<1x8x32xf32>,
    %c1_70 = arith.constant 1 : index
    %c0_71 = arith.constant 0 : index
    %c0_72 = arith.constant 0 : index
    %238 = vector.load %arg12[%c1_70, %c0_71, %c0_72] : memref<2x8x32xf32, #tpu.memory_space<vmem>>, vector<1x8x32xf32>
    %239 = vector.shape_cast %238 : vector<1x8x32xf32> to vector<8x32xf32>
    %cst_73 = arith.constant dense<0.000000e+00> : vector<8x32xf32>
    %240 = tpu.matmul %239, %228, %cst_73 {dimension_numbers = #tpu.dot_dimension_numbers<[1], [0], [0], [1], [0, 0, 1, 1], [], []>} : vector<8x32xf32>, vector<32x32xf32>, vector<8x32xf32> -> vector<8x32xf32>
    %241 = vector.broadcast %229 : vector<1x32xf32> to vector<8x32xf32>
    %242 = arith.addf %240, %241 : vector<8x32xf32>
    %c1_74 = arith.constant 1 : index
    %c0_75 = arith.constant 0 : index
    %c0_76 = arith.constant 0 : index
    %243 = vector.load %arg10[%c1_74, %c0_75, %c0_76] : memref<2x8x32xf32, #tpu.memory_space<vmem>>, vector<1x8x32xf32>
    %244 = vector.shape_cast %243 : vector<1x8x32xf32> to vector<8x32xf32>
    %245 = vector.shape_cast %242 : vector<8x32xf32> to vector<1x8x32xf32>
    tpu.vector_store %arg10[%c1_74, %c0_75, %c0_76], %245 {strides = array<i32>} : memref<2x8x32xf32, #tpu.memory_space<vmem>>, vector<1x8x32xf32>,
    return
  }
  func.func @transform_0(%arg0: i32) -> (i32, i32) {
    %c0_i32 = arith.constant 0 : i32
    %c0_i32_0 = arith.constant 0 : i32
    %c0_i32_1 = arith.constant 0 : i32
    return %c0_i32, %c0_i32_0 : i32, i32
  }
  func.func @transform_1(%arg0: i32) -> (i32, i32, i32) {
    %c0_i32 = arith.constant 0 : i32
    %c0_i32_0 = arith.constant 0 : i32
    %c0_i32_1 = arith.constant 0 : i32
    %c0_i32_2 = arith.constant 0 : i32
    return %c0_i32, %c0_i32_0, %c0_i32_1 : i32, i32, i32
  }
  func.func @transform_2(%arg0: i32) -> (i32, i32) {
    %c0_i32 = arith.constant 0 : i32
    %c0_i32_0 = arith.constant 0 : i32
    %c0_i32_1 = arith.constant 0 : i32
    return %c0_i32, %c0_i32_0 : i32, i32
  }
  func.func @transform_3(%arg0: i32) -> (i32, i32) {
    %c0_i32 = arith.constant 0 : i32
    %c0_i32_0 = arith.constant 0 : i32
    %c0_i32_1 = arith.constant 0 : i32
    return %c0_i32, %c0_i32_0 : i32, i32
  }
  func.func @transform_4(%arg0: i32) -> (i32, i32) {
    %c0_i32 = arith.constant 0 : i32
    %c0_i32_0 = arith.constant 0 : i32
    %c0_i32_1 = arith.constant 0 : i32
    return %c0_i32, %c0_i32_0 : i32, i32
  }
  func.func @transform_5(%arg0: i32) -> (i32, i32) {
    %c0_i32 = arith.constant 0 : i32
    %c0_i32_0 = arith.constant 0 : i32
    %c0_i32_1 = arith.constant 0 : i32
    return %c0_i32, %c0_i32_0 : i32, i32
  }
  func.func @transform_6(%arg0: i32) -> (i32, i32) {
    %c0_i32 = arith.constant 0 : i32
    %c0_i32_0 = arith.constant 0 : i32
    %c0_i32_1 = arith.constant 0 : i32
    return %c0_i32, %c0_i32_0 : i32, i32
  }
  func.func @transform_7(%arg0: i32) -> (i32, i32) {
    %c0_i32 = arith.constant 0 : i32
    %c0_i32_0 = arith.constant 0 : i32
    %c0_i32_1 = arith.constant 0 : i32
    return %c0_i32, %c0_i32_0 : i32, i32
  }
  func.func @transform_8(%arg0: i32) -> (i32, i32) {
    %c0_i32 = arith.constant 0 : i32
    %c0_i32_0 = arith.constant 0 : i32
    %c0_i32_1 = arith.constant 0 : i32
    return %c0_i32, %c0_i32_0 : i32, i32
  }
  func.func @transform_9(%arg0: i32) -> (i32, i32, i32) {
    %c0_i32 = arith.constant 0 : i32
    %c0_i32_0 = arith.constant 0 : i32
    %c0_i32_1 = arith.constant 0 : i32
    %c0_i32_2 = arith.constant 0 : i32
    return %c0_i32, %c0_i32_0, %c0_i32_1 : i32, i32, i32
  }
  func.func @transform_10(%arg0: i32) -> (i32, i32, i32) {
    %c0_i32 = arith.constant 0 : i32
    %c0_i32_0 = arith.constant 0 : i32
    %c0_i32_1 = arith.constant 0 : i32
    %c0_i32_2 = arith.constant 0 : i32
    return %c0_i32, %c0_i32_0, %c0_i32_1 : i32, i32, i32
  }
}

</mosaic_0001>

<bundles_post_ra>
// kernel: decoder_forward.1
= control target key start
LH: loop header
LB: loop body
LE: loop exit
PB: predicated region body
PF: predicated region fallthrough
CT: control target
= control target key end

     0   :  { %16 = vsyncpa [#allocation4], 0  ;;  %v1937_v2 = vmov 0   ;;  %s2368_s0 = inlined_call_operand.vmem [shape: s32[16,1], index: 0, kind: input, shape index: {}]   ;;  %s2369_s1 = inlined_call_operand.vmem [shape: f32[1,2,32], index: 1, kind: input, shape index: {}]   ;;  %s2370_s2 = inlined_call_operand.vmem [shape: f32[32,16], index: 2, kind: input, shape index: {}]   ;;  %s2371_s3 = inlined_call_operand.vmem [shape: f32[16,96], index: 3, kind: input, shape index: {}]   ;;  %s2372_s4 = inlined_call_operand.vmem [shape: f32[32,96], index: 4, kind: input, shape index: {}]   ;;  %s2373_s5 = inlined_call_operand.vmem [shape: f32[1,96], index: 5, kind: input, shape index: {}]   ;;  %s2374_s6 = inlined_call_operand.vmem [shape: f32[1,32], index: 6, kind: input, shape index: {}]   ;;  %s2375_s7 = inlined_call_operand.vmem [shape: f32[32,32], index: 7, kind: input, shape index: {}]   ;;  %s2376_s8 = inlined_call_operand.vmem [shape: f32[1,32], index: 8, kind: input, shape index: {}]   ;;  %s2377_s9 = inlined_call_operand.hbm [shape: f32[2,8,32], index: 9, kind: output, shape index: {0}]   ;;  %s2378_s10 = inlined_call_operand.hbm [shape: f32[1,2,32], index: 10, kind: output, shape index: {1}]  }
   0x1   :  { %v36_v0 = vld [vmem:[%s2368_s0] sm:$0xff]  ;;  %v55_v1 = vld [vmem:[%s2370_s2 + $0x18] sm:$0xff]  ;;  %1844 = vset.pattern.permute.xlu0 %v1937_v2  ;;  %v54_v3 = vld [vmem:[%s2370_s2 + $0x10] sm:$0xff] }
   0x2   :  { %1705 = vmatprep.subr.mxu0 %v55_v1  ;;  %41 = vperm.xlu0 %1844, %v36_v0   ;;  %v53_v4 = vld [vmem:[%s2370_s2 + $0x8] sm:$0xff] }
   0x3   :  { %1706 = vmatpush3.msra.mxu0 %v55_v1 }
   0x4   :  { %17 = vsyncpa [#allocation6], 0  ;;  %v37_v5 = vld [vmem:[%s2368_s0 + $0x8] sm:$0xff]  ;;  %1707 = vmatprep.subr.mxu0 %v54_v3  ;;  %v52_v6 = vld [vmem:[%s2370_s2] sm:$0xff]  ;;  %v1938_v8 = vmov 0.0   ;;  %v38_v9 = vlaneseq  ;;  %vm56_vm0 = vcmask 261120  }
   0x5   :  { %1708 = vmatpush3.msra.mxu0 %v54_v3  ;;  %v139_v7 = vld [vmem:[%s2371_s3 + $0x8] sm:$0xff]  ;;  %v138_v15 = vld [vmem:[%s2371_s3] sm:$0xff]  ;;  %v2037_v16 = vld [vmem:[%s2372_s4 + $0x18] sm:$0xff]  ;;  %vm1939_vm3 = vmmov 0   ;;  %s1940_s16 = smov 64   ;;  %vm147_vm4 = vcmask 130048  }
   0x6   :  { %1709 = vmatprep.subr.mxu0 %v53_v4  ;;  %1716 = vmatprep.subr.mxu1 %v139_v7  ;;  %v39_v10 = vand.u32 127, %v38_v9  ;;  %v2044_v17 = vld [vmem:[%s2372_s4 + $0x10] sm:$0xff]  ;;  %v2050_v18 = vld [vmem:[%s2372_s4 + $0x8] sm:$0xff]  ;;  %v2057_v19 = vld [vmem:[%s2372_s4] sm:$0xff]  ;;  %s1942_s18 = smov 96   ;;  %vm383_vm5 = vcmask 253952  }
   0x7   :  { %44 = vperm.xlu0 %1844, %v37_v5   ;;  %1710 = vmatpush3.msra.mxu0 %v53_v4  ;;  %v1627_v20 = vld [vmem:[%s2374_s6] ss:$0 sm:$0xff]  ;;  %vm1423_vm6 = vcmask 261126  }
   0x8   :  { %1711 = vmatprep.subr.mxu0 %v52_v6  ;;  %1717 = vmatpush3.msra.mxu1 %v139_v7  ;;  %v234_v23 = vld [vmem:[%s2369_s1] sm:$0x3] }
   0x9   :  { %1712 = vmatpush3.msra.mxu0 %v52_v6  ;;  %1718 = vmatprep.subr.mxu1 %v138_v15  ;;  %v1622_v24 = vld [vmem:[%s2373_s5] ss:$0 sm:$0xff]  ;;  %s1941_s5 = smov 32  }
   0xa   :  { %1734 = vmatprep.subr.mxu0 %v1938_v8  ;;  %1719 = vmatpush3.msra.mxu1 %v138_v15 }
   0xb   :  { %1723 = vmatprep.subr.mxu1 %v1938_v8  ;;  %320 = vrot.lane.b32.xlu1 %v1627_v20, %s1940_s16 }
  0x7d   :  { %v42_v11 = vpop.permute.xlu0 %41  ;;  %v2097_v28 = vpop.permute.xlu1 %320 }
  0x7e   :  { %vm46_vm1 = vcmp.eq.s32.totalorder %v42_v11, %v39_v10 }
  0x7f   :  { %v1618_v12 = vsel %vm46_vm1, 1.0, %v1938_v8 }
  0x80   :  { %1713 = vmatprep.mubr.msk.f32.mxu0 %vm56_vm0, %v1618_v12 }
  0x82   :  { %v45_v13 = vpop.permute.xlu0 %44 }
  0x83   :  { %vm47_vm2 = vcmp.eq.s32.totalorder %v45_v13, %v39_v10 }
  0x84   :  { %v1619_v14 = vsel %vm47_vm2, 1.0, %v1938_v8 }
  0x85   :  { %1714 = vmatmul.mubr.msk.f32.vlgmr.msra.gmra.mxu0 %vm56_vm0, %v1619_v14 }
  0x86   :  { %1735 = vmatpush3.msra.mxu0 %v2037_v16  ;;  %1742 = vmatprep.mubr.msk.f32.mxu0 %vm1939_vm3, %v1938_v8 }
  0x87   :  { %1736 = vmatprep.subr.mxu0 %v1938_v8 }
  0x88   :  { %1737 = vmatpush3.msra.mxu0 %v2044_v17 }
  0x89   :  { %1738 = vmatprep.subr.mxu0 %v1938_v8 }
  0x8a   :  { %1739 = vmatpush3.msra.mxu0 %v2050_v18 }
  0x8b   :  { %1740 = vmatprep.subr.mxu0 %v1938_v8 }
  0x8c   :  { %1741 = vmatpush3.msra.mxu0 %v2057_v19 }
  0x8d   :  { %1756 = vmatprep.subr.mxu0 %v1938_v8 }
 0x145   :  { %v1715_v21 = vpop.f32.mrf.mxu0 }
 0x147   :  { %v129_v22 = vpop.f32.mrf.mxu0 }
 0x148   :  { %1720 = vmatprep.mubr.msk.f32.mxu1 %vm147_vm4, %v129_v22 }
 0x149   :  { %1721 = vmatmul.mubr.msk.f32.vlgmr.msra.gmra.mxu1 %vm147_vm4, %v1715_v21 }
 0x14a   :  { %1724 = vmatpush3.msra.mxu1 %v2037_v16  ;;  %1731 = vmatprep.mubr.msk.f32.mxu1 %vm1939_vm3, %v1938_v8 }
 0x14b   :  { %1725 = vmatprep.subr.mxu1 %v1938_v8 }
 0x14c   :  { %1726 = vmatpush3.msra.mxu1 %v2044_v17 }
 0x14d   :  { %1727 = vmatprep.subr.mxu1 %v1938_v8 }
 0x14e   :  { %1728 = vmatpush3.msra.mxu1 %v2050_v18 }
 0x14f   :  { %1729 = vmatprep.subr.mxu1 %v1938_v8 }
 0x150   :  { %1730 = vmatpush3.msra.mxu1 %v2057_v19 }
 0x151   :  { %1732 = vmatmul.mubr.msk.f32.vlgmr.msra.gmra.mxu1 %vm56_vm0, %v234_v23  ;;  %1745 = vmatprep.subr.mxu1 %v1938_v8 }
 0x152   :  { %1746 = vmatpush3.msra.mxu1 %v2037_v16  ;;  %1753 = vmatprep.mubr.msk.f32.mxu1 %vm1939_vm3, %v1938_v8 }
 0x153   :  { %1747 = vmatprep.subr.mxu1 %v1938_v8 }
 0x154   :  { %1748 = vmatpush3.msra.mxu1 %v2044_v17 }
 0x155   :  { %1749 = vmatprep.subr.mxu1 %v1938_v8 }
 0x156   :  { %1750 = vmatpush3.msra.mxu1 %v2050_v18 }
 0x157   :  { %1751 = vmatprep.subr.mxu1 %v1938_v8 }
 0x158   :  { %1752 = vmatpush3.msra.mxu1 %v2057_v19 }
 0x159   :  { %1767 = vmatprep.subr.mxu1 %v1938_v8 }
 0x209   :  { %v1722_v25 = vpop.f32.mrf.mxu1 }
 0x20a   :  { %v2095_v26 = vadd.f32 %v1722_v25, %v1622_v24 }
 0x20b   :  { %v220_v27 = vpop.f32.mrf.mxu1 }
 0x20c   :  { %v2101_v32 = vadd.f32 %v1622_v24, %v220_v27 }
 0x211   :  { %v304_v29 = vpop.f32.mrf.mxu1 }
 0x212   :  { %v323_v30 = vadd.f32 %v2097_v28, %v304_v29  ;;  %v308_v33 = vadd.f32 %v304_v29, %v2101_v32 }
 0x213   :  { %v1733_v31 = vpop.f32.mrf.mxu1 }
 0x214   :  { %325 = vrot.lane.b32.xlu1 %v323_v30, %s1940_s16  ;;  %v1626_v34 = vmul.f32 -1.442695, %v308_v33 }
 0x216   :  { %1845 = vpow2.f32 %v1626_v34 }
 0x223   :  { %v1846_v35 = vpop.eup %1845 }
 0x224   :  { %v312_v36 = vadd.f32 1.0, %v1846_v35 }
 0x226   :  { %1847 = vrcp.f32 %v312_v36 }
 0x233   :  { %v1848_v37 = vpop.eup %1847 }
 0x234   :  { %v335_v44 = vsub.f32 1.0, %v1848_v37 }
 0x286   :  { %v326_v38 = vpop.permute.xlu1 %325 }
 0x287   :  { %v328_v39 = vmul.f32 %v1848_v37, %v326_v38 }
 0x289   :  { %330 = vrot.lane.b32.xlu0 %v328_v39, %s1940_s16 }
 0x28d   :  { %341 = vrot.lane.b32.xlu0 %v234_v23, %s1941_s5 }
 0x2fb   :  { %v331_v40 = vpop.permute.xlu0 %330 }
 0x2fc   :  { %v333_v41 = vadd.f32 %v331_v40, %v2101_v32 }
 0x2fe   :  { %1849 = vtanh.f32 %v333_v41 }
 0x2ff   :  { %v342_v43 = vpop.permute.xlu0 %341 }
 0x300   :  { %v344_v46 = vmul.f32 %v1848_v37, %v342_v43 }
 0x30b   :  { %v1850_v42 = vpop.eup %1849 }
 0x30c   :  { %337 = vrot.lane.b32.xlu1 %v1850_v42, %s1942_s18 }
 0x37e   :  { %v338_v45 = vpop.permute.xlu1 %337 }
 0x37f   :  { %v340_v47 = vmul.f32 %v338_v45, %v335_v44 }
 0x381   :  { %v2107_v48 = vadd.f32 %v344_v46, %v340_v47 }
 0x383   :  { %386 = vrot.lane.b32.xlu1 %v2107_v48, %s1942_s18  ;;  %v489_v2 = vrot.slane %v2107_v48, 6 }
 0x3f5   :  { %v387_v49 = vpop.permute.xlu1 %386 }
 0x3f6   :  { %1743 = vmatmul.mubr.msk.f32.vlgmr.msra.gmra.mxu0 %vm56_vm0, %v387_v49 }
 0x3f7   :  { %1757 = vmatpush3.msra.mxu0 %v2037_v16  ;;  %1764 = vmatprep.mubr.msk.f32.mxu0 %vm1939_vm3, %v1938_v8 }
 0x3f8   :  { %1758 = vmatprep.subr.mxu0 %v1938_v8 }
 0x3f9   :  { %1759 = vmatpush3.msra.mxu0 %v2044_v17 }
 0x3fa   :  { %1760 = vmatprep.subr.mxu0 %v1938_v8 }
 0x3fb   :  { %1761 = vmatpush3.msra.mxu0 %v2050_v18 }
 0x3fc   :  { %1762 = vmatprep.subr.mxu0 %v1938_v8 }
 0x3fd   :  { %1763 = vmatpush3.msra.mxu0 %v2057_v19 }
 0x3fe   :  { %1778 = vmatprep.subr.mxu0 %v1938_v8 }
 0x4b6   :  { %v456_v50 = vpop.f32.mrf.mxu0 }
 0x4b7   :  { %v470_v51 = vadd.f32 %v456_v50, %v2097_v28  ;;  %v461_v54 = vrot.slane %v456_v50, 6 }
 0x4b8   :  { %v1744_v52 = vpop.f32.mrf.mxu0 }
 0x4b9   :  { %v472_v53 = vrot.slane %v470_v51, 6  ;;  %v463_v55 = vadd.f32 %v461_v54, %v2101_v32 }
 0x4bb   :  { %473 = vrot.lane.b32.xlu0 %v472_v53, %s1940_s16  ;;  %v1629_v56 = vmul.f32 -1.442695, %v463_v55 }
 0x4bd   :  { %1851 = vpow2.f32 %v1629_v56 }
 0x4ca   :  { %v1852_v57 = vpop.eup %1851 }
 0x4cb   :  { %v467_v58 = vadd.f32 1.0, %v1852_v57 }
 0x4cd   :  { %1853 = vrcp.f32 %v467_v58 }
 0x4da   :  { %v1854_v59 = vpop.eup %1853 }
 0x4db   :  { %v483_v1 = vsub.f32 1.0, %v1854_v59  ;;  %v491_v5 = vmul.f32 %v1854_v59, %v489_v2 }
 0x52d   :  { %v474_v60 = vpop.permute.xlu0 %473 }
 0x52e   :  { %v476_v61 = vmul.f32 %v1854_v59, %v474_v60 }
 0x530   :  { %478 = vrot.lane.b32.xlu1 %v476_v61, %s1940_s16 }
 0x5a2   :  { %v479_v62 = vpop.permute.xlu1 %478 }
 0x5a3   :  { %v481_v63 = vadd.f32 %v479_v62, %v2101_v32 }
 0x5a5   :  { %1855 = vtanh.f32 %v481_v63 }
 0x5b2   :  { %v1856_v0 = vpop.eup %1855 }
 0x5b3   :  { %485 = vrot.lane.b32.xlu0 %v1856_v0, %s1942_s18 }
 0x625   :  { %v486_v3 = vpop.permute.xlu0 %485 }
 0x626   :  { %v488_v4 = vmul.f32 %v486_v3, %v483_v1 }
 0x628   :  { %v2129_v6 = vadd.f32 %v491_v5, %v488_v4 }
 0x62a   :  { %v534_v7 = vrot.slane %v2129_v6, 2  ;;  %v638_v34 = vrot.slane %v2129_v6, 6 }
 0x62c   :  { %535 = vrot.lane.b32.xlu1 %v534_v7, %s1942_s18 }
 0x69e   :  { %v536_v10 = vpop.permute.xlu1 %535 }
 0x69f   :  { %1754 = vmatmul.mubr.msk.f32.vlgmr.msra.gmra.mxu1 %vm56_vm0, %v536_v10 }
 0x6a0   :  { %1768 = vmatpush3.msra.mxu1 %v2037_v16  ;;  %1775 = vmatprep.mubr.msk.f32.mxu1 %vm1939_vm3, %v1938_v8 }
 0x6a1   :  { %1769 = vmatprep.subr.mxu1 %v1938_v8 }
 0x6a2   :  { %1770 = vmatpush3.msra.mxu1 %v2044_v17 }
 0x6a3   :  { %1771 = vmatprep.subr.mxu1 %v1938_v8 }
 0x6a4   :  { %1772 = vmatpush3.msra.mxu1 %v2050_v18 }
 0x6a5   :  { %1773 = vmatprep.subr.mxu1 %v1938_v8 }
 0x6a6   :  { %1774 = vmatpush3.msra.mxu1 %v2057_v19 }
 0x6a7   :  { %1789 = vmatprep.subr.mxu1 %v1938_v8 }
 0x75f   :  { %v605_v11 = vpop.f32.mrf.mxu1 }
 0x760   :  { %v619_v12 = vadd.f32 %v605_v11, %v2097_v28  ;;  %v610_v15 = vrot.slane %v605_v11, 4 }
 0x761   :  { %v1755_v13 = vpop.f32.mrf.mxu1 }
 0x762   :  { %v621_v14 = vrot.slane %v619_v12, 4  ;;  %v612_v20 = vadd.f32 %v610_v15, %v2101_v32 }
 0x764   :  { %622 = vrot.lane.b32.xlu0 %v621_v14, %s1940_s16  ;;  %v1631_v21 = vmul.f32 -1.442695, %v612_v20 }
 0x766   :  { %1857 = vpow2.f32 %v1631_v21 }
 0x773   :  { %v1858_v22 = vpop.eup %1857 }
 0x774   :  { %v616_v23 = vadd.f32 1.0, %v1858_v22 }
 0x776   :  { %1859 = vrcp.f32 %v616_v23 }
 0x783   :  { %v1860_v24 = vpop.eup %1859 }
 0x784   :  { %v632_v33 = vsub.f32 1.0, %v1860_v24  ;;  %v640_v36 = vmul.f32 %v1860_v24, %v638_v34 }
 0x7d6   :  { %v623_v25 = vpop.permute.xlu0 %622 }
 0x7d7   :  { %v625_v27 = vmul.f32 %v1860_v24, %v623_v25 }
 0x7d9   :  { %627 = vrot.lane.b32.xlu1 %v625_v27, %s1940_s16 }
 0x84b   :  { %v628_v29 = vpop.permute.xlu1 %627 }
 0x84c   :  { %v630_v30 = vadd.f32 %v628_v29, %v2101_v32 }
 0x84e   :  { %1861 = vtanh.f32 %v630_v30 }
 0x85b   :  { %v1862_v31 = vpop.eup %1861 }
 0x85c   :  { %634 = vrot.lane.b32.xlu0 %v1862_v31, %s1942_s18 }
 0x8ce   :  { %v635_v35 = vpop.permute.xlu0 %634 }
 0x8cf   :  { %v637_v37 = vmul.f32 %v635_v35, %v632_v33 }
 0x8d1   :  { %v2151_v38 = vadd.f32 %v640_v36, %v637_v37 }
 0x8d3   :  { %v682_v39 = vrot.slane %v2151_v38, 4  ;;  %v786_v58 = vrot.slane %v2151_v38, 6 }
 0x8d5   :  { %683 = vrot.lane.b32.xlu1 %v682_v39, %s1942_s18 }
 0x947   :  { %v684_v40 = vpop.permute.xlu1 %683 }
 0x948   :  { %1765 = vmatmul.mubr.msk.f32.vlgmr.msra.gmra.mxu0 %vm56_vm0, %v684_v40 }
 0x949   :  { %1779 = vmatpush3.msra.mxu0 %v2037_v16  ;;  %1786 = vmatprep.mubr.msk.f32.mxu0 %vm1939_vm3, %v1938_v8 }
 0x94a   :  { %1780 = vmatprep.subr.mxu0 %v1938_v8 }
 0x94b   :  { %1781 = vmatpush3.msra.mxu0 %v2044_v17 }
 0x94c   :  { %1782 = vmatprep.subr.mxu0 %v1938_v8 }
 0x94d   :  { %1783 = vmatpush3.msra.mxu0 %v2050_v18 }
 0x94e   :  { %1784 = vmatprep.subr.mxu0 %v1938_v8 }
 0x94f   :  { %1785 = vmatpush3.msra.mxu0 %v2057_v19 }
 0x950   :  { %1800 = vmatprep.subr.mxu0 %v1938_v8 }
 0xa08   :  { %v753_v41 = vpop.f32.mrf.mxu0 }
 0xa09   :  { %v767_v42 = vadd.f32 %v753_v41, %v2097_v28  ;;  %v758_v45 = vrot.slane %v753_v41, 2 }
 0xa0a   :  { %v1766_v43 = vpop.f32.mrf.mxu0 }
 0xa0b   :  { %v769_v44 = vrot.slane %v767_v42, 2  ;;  %v760_v46 = vadd.f32 %v758_v45, %v2101_v32 }
 0xa0d   :  { %770 = vrot.lane.b32.xlu0 %v769_v44, %s1940_s16  ;;  %v1633_v47 = vmul.f32 -1.442695, %v760_v46 }
 0xa0f   :  { %1863 = vpow2.f32 %v1633_v47 }
 0xa1c   :  { %v1864_v49 = vpop.eup %1863 }
 0xa1d   :  { %v764_v50 = vadd.f32 1.0, %v1864_v49 }
 0xa1f   :  { %1865 = vrcp.f32 %v764_v50 }
 0xa2c   :  { %v1866_v51 = vpop.eup %1865 }
 0xa2d   :  { %v780_v57 = vsub.f32 1.0, %v1866_v51  ;;  %v788_v60 = vmul.f32 %v1866_v51, %v786_v58 }
 0xa7f   :  { %v771_v52 = vpop.permute.xlu0 %770 }
 0xa80   :  { %v773_v53 = vmul.f32 %v1866_v51, %v771_v52 }
 0xa82   :  { %775 = vrot.lane.b32.xlu1 %v773_v53, %s1940_s16 }
 0xaf4   :  { %v776_v54 = vpop.permute.xlu1 %775 }
 0xaf5   :  { %v778_v55 = vadd.f32 %v776_v54, %v2101_v32 }
 0xaf7   :  { %1867 = vtanh.f32 %v778_v55 }
 0xb04   :  { %v1868_v56 = vpop.eup %1867 }
 0xb05   :  { %782 = vrot.lane.b32.xlu0 %v1868_v56, %s1942_s18 }
 0xb77   :  { %v783_v59 = vpop.permute.xlu0 %782 }
 0xb78   :  { %v785_v61 = vmul.f32 %v783_v59, %v780_v57 }
 0xb7a   :  { %v2173_v62 = vadd.f32 %v788_v60, %v785_v61 }
 0xb7c   :  { %v832_v63 = vrot.slane %v2173_v62, 6 }
 0xb7e   :  { %833 = vrot.lane.b32.xlu1 %v832_v63, %s1942_s18 }
 0xbf0   :  { %v834_v0 = vpop.permute.xlu1 %833 }
 0xbf1   :  { %1776 = vmatmul.mubr.msk.f32.vlgmr.msra.gmra.mxu1 %vm56_vm0, %v834_v0 }
 0xbf2   :  { %1790 = vmatpush3.msra.mxu1 %v2037_v16  ;;  %1797 = vmatprep.mubr.msk.f32.mxu1 %vm1939_vm3, %v1938_v8 }
 0xbf3   :  { %1791 = vmatprep.subr.mxu1 %v1938_v8 }
 0xbf4   :  { %1792 = vmatpush3.msra.mxu1 %v2044_v17 }
 0xbf5   :  { %1793 = vmatprep.subr.mxu1 %v1938_v8 }
 0xbf6   :  { %1794 = vmatpush3.msra.mxu1 %v2050_v18 }
 0xbf7   :  { %1795 = vmatprep.subr.mxu1 %v1938_v8 }
 0xbf8   :  { %1796 = vmatpush3.msra.mxu1 %v2057_v19 }
 0xbf9   :  { %1811 = vmatprep.subr.mxu1 %v1938_v8 }
 0xcb1   :  { %v903_v32 = vpop.f32.mrf.mxu1 }
 0xcb2   :  { %v914_v1 = vadd.f32 %v903_v32, %v2097_v28  ;;  %v907_v3 = vadd.f32 %v903_v32, %v2095_v26 }
 0xcb3   :  { %v1777_v2 = vpop.f32.mrf.mxu1 }
 0xcb4   :  { %916 = vrot.lane.b32.xlu0 %v914_v1, %s1940_s16  ;;  %v1635_v4 = vmul.f32 -1.442695, %v907_v3 }
 0xcb6   :  { %1869 = vpow2.f32 %v1635_v4 }
 0xcc3   :  { %v1870_v5 = vpop.eup %1869 }
 0xcc4   :  { %v911_v7 = vadd.f32 1.0, %v1870_v5 }
 0xcc6   :  { %1871 = vrcp.f32 %v911_v7 }
 0xcd3   :  { %v1872_v10 = vpop.eup %1871 }
 0xcd4   :  { %v926_v20 = vsub.f32 1.0, %v1872_v10  ;;  %v933_v22 = vmul.f32 %v1872_v10, %v832_v63 }
 0xd26   :  { %v917_v11 = vpop.permute.xlu0 %916 }
 0xd27   :  { %v919_v12 = vmul.f32 %v1872_v10, %v917_v11 }
 0xd29   :  { %921 = vrot.lane.b32.xlu1 %v919_v12, %s1940_s16 }
 0xd9b   :  { %v922_v13 = vpop.permute.xlu1 %921 }
 0xd9c   :  { %v924_v14 = vadd.f32 %v922_v13, %v2095_v26 }
 0xd9e   :  { %1873 = vtanh.f32 %v924_v14 }
 0xdab   :  { %v1874_v15 = vpop.eup %1873 }
 0xdac   :  { %928 = vrot.lane.b32.xlu0 %v1874_v15, %s1942_s18 }
 0xe1e   :  { %v929_v21 = vpop.permute.xlu0 %928 }
 0xe1f   :  { %v931_v23 = vmul.f32 %v929_v21, %v926_v20 }
 0xe21   :  { %v2194_v24 = vadd.f32 %v933_v22, %v931_v23 }
 0xe23   :  { %974 = vrot.lane.b32.xlu1 %v2194_v24, %s1942_s18  ;;  %v1077_v42 = vrot.slane %v2194_v24, 6 }
 0xe95   :  { %v975_v25 = vpop.permute.xlu1 %974 }
 0xe96   :  { %1787 = vmatmul.mubr.msk.f32.vlgmr.msra.gmra.mxu0 %vm56_vm0, %v975_v25 }
 0xe97   :  { %1801 = vmatpush3.msra.mxu0 %v2037_v16  ;;  %1808 = vmatprep.mubr.msk.f32.mxu0 %vm1939_vm3, %v1938_v8 }
 0xe98   :  { %1802 = vmatprep.subr.mxu0 %v1938_v8 }
 0xe99   :  { %1803 = vmatpush3.msra.mxu0 %v2044_v17 }
 0xe9a   :  { %1804 = vmatprep.subr.mxu0 %v1938_v8 }
 0xe9b   :  { %1805 = vmatpush3.msra.mxu0 %v2050_v18 }
 0xe9c   :  { %1806 = vmatprep.subr.mxu0 %v1938_v8 }
 0xe9d   :  { %1807 = vmatpush3.msra.mxu0 %v2057_v19 }
 0xe9e   :  { %1822 = vmatprep.subr.mxu0 %v1938_v8 }
 0xf56   :  { %v1044_v27 = vpop.f32.mrf.mxu0 }
 0xf57   :  { %v1058_v16 = vadd.f32 %v1044_v27, %v2097_v28  ;;  %v1049_v31 = vrot.slane %v1044_v27, 6  ;;  %v1943_v27 = vmov 1966171168  }
 0xf58   :  { %v1788_v29 = vpop.f32.mrf.mxu0 }
 0xf59   :  { %v1060_v30 = vrot.slane %v1058_v16, 6  ;;  %v1051_v17 = vadd.f32 %v1049_v31, %v2095_v26  ;;  %v348_v16 = vunpack.c.l.s4 %v1943_v27 }
 0xf5b   :  { %1061 = vrot.lane.b32.xlu0 %v1060_v30, %s1940_s16  ;;  %v1637_v33 = vmul.f32 -1.442695, %v1051_v17  ;;  %v349_v29 = vunpack.c.0.s8 %v348_v16  ;;  %v351_v30 = vshrl.u32 %v38_v9, 7  ;;  %v791_v9 = vcombine.high %v2173_v62, %v2173_v62 }
 0xf5d   :  { %1875 = vpow2.f32 %v1637_v33  ;;  %v2241_v31 = vsub.s32 %v349_v29, %v351_v30 }
 0xf5f   :  { %v500_v17 = vrot.slane %v2129_v6, %v2241_v31  ;;  %v798_v6 = vrot.slane %v791_v9, %v2241_v31 }
 0xf61   :  { %v806_v62 = vrot.slane %v798_v6, %v2241_v31 }
 0xf6a   :  { %v1876_v34 = vpop.eup %1875 }
 0xf6b   :  { %v1055_v18 = vadd.f32 1.0, %v1876_v34  ;;  %v2249_v34 = vsub.s32 0, %v351_v30 }
 0xf6d   :  { %1877 = vrcp.f32 %v1055_v18 }
 0xf7a   :  { %v1878_v35 = vpop.eup %1877 }
 0xf7b   :  { %v1071_v41 = vsub.f32 1.0, %v1878_v35  ;;  %v1079_v45 = vmul.f32 %v1878_v35, %v1077_v42  ;;  %v942_v42 = vrot.slane %v2194_v24, %v2241_v31 }
 0xfcd   :  { %v1062_v36 = vpop.permute.xlu0 %1061 }
 0xfce   :  { %v1064_v19 = vmul.f32 %v1878_v35, %v1062_v36  ;;  %v643_v36 = vcombine.high %v2151_v38, %v2151_v38 }
 0xfd0   :  { %1066 = vrot.lane.b32.xlu1 %v1064_v19, %s1940_s16 }
0x1042   :  { %v1067_v37 = vpop.permute.xlu1 %1066 }
0x1043   :  { %v1069_v39 = vadd.f32 %v1067_v37, %v2095_v26 }
0x1045   :  { %1879 = vtanh.f32 %v1069_v39 }
0x1052   :  { %v1880_v40 = vpop.eup %1879 }
0x1053   :  { %1073 = vrot.lane.b32.xlu0 %v1880_v40, %s1942_s18  ;;  %v650_v40 = vrot.slane %v643_v36, %v2241_v31 }
0x10c5   :  { %v1074_v43 = vpop.permute.xlu0 %1073 }
0x10c6   :  { %v1076_v44 = vmul.f32 %v1074_v43, %v1071_v41  ;;  %v658_v41 = vrot.slane %v650_v40, %v2241_v31 }
0x10c8   :  { %v2216_v46 = vadd.f32 %v1079_v45, %v1076_v44  ;;  %v669_v44 = vrot.slane %v658_v41, %v2249_v34  ;;  %v814_v45 = vcombine.high %v806_v62, %v806_v62  ;;  %v1425_v41 = vld [vmem:[%s2375_s7] sm:$0xff] }
0x10ca   :  { %v1122_v47 = vrot.slane %v2216_v46, 2  ;;  %v1226_v2 = vrot.slane %v2216_v46, 6  ;;  %v1088_v43 = vrot.slane %v2216_v46, %v2241_v31 }
0x10cc   :  { %1123 = vrot.lane.b32.xlu1 %v1122_v47, %s1942_s18 }
0x113e   :  { %v1124_v49 = vpop.permute.xlu1 %1123 }
0x113f   :  { %1798 = vmatmul.mubr.msk.f32.vlgmr.msra.gmra.mxu1 %vm56_vm0, %v1124_v49  ;;  %v819_v49 = vrot.slane %v814_v45, %v2249_v34 }
0x1140   :  { %1819 = vmatprep.mubr.msk.f32.mxu1 %vm1939_vm3, %v1938_v8 }
0x11ff   :  { %v1193_v50 = vpop.f32.mrf.mxu1 }
0x1200   :  { %v1207_v51 = vadd.f32 %v1193_v50, %v2097_v28  ;;  %v1198_v54 = vrot.slane %v1193_v50, 4  ;;  %v950_v50 = vrot.slane %v942_v42, %v2241_v31 }
0x1201   :  { %v1799_v52 = vpop.f32.mrf.mxu1 }
0x1202   :  { %v1209_v53 = vrot.slane %v1207_v51, 4  ;;  %v1200_v55 = vadd.f32 %v1198_v54, %v2095_v26  ;;  %v1096_v51 = vrot.slane %v1088_v43, %v2241_v31  ;;  %v961_v24 = vrot.slane %v950_v50, %v2249_v34 }
0x1204   :  { %1210 = vrot.lane.b32.xlu0 %v1209_v53, %s1940_s16  ;;  %v1639_v56 = vmul.f32 -1.442695, %v1200_v55  ;;  %v1104_v52 = vcombine.high %v1096_v51, %v1096_v51 }
0x1206   :  { %1881 = vpow2.f32 %v1639_v56  ;;  %v1109_v53 = vrot.slane %v1104_v52, %v2249_v34 }
0x1213   :  { %v1882_v57 = vpop.eup %1881 }
0x1214   :  { %v1204_v58 = vadd.f32 1.0, %v1882_v57 }
0x1216   :  { %1883 = vrcp.f32 %v1204_v58 }
0x1223   :  { %v1884_v59 = vpop.eup %1883 }
0x1224   :  { %v1220_v1 = vsub.f32 1.0, %v1884_v59  ;;  %v1228_v4 = vmul.f32 %v1884_v59, %v1226_v2 }
0x1276   :  { %v1211_v60 = vpop.permute.xlu0 %1210 }
0x1277   :  { %v1213_v61 = vmul.f32 %v1884_v59, %v1211_v60 }
0x1279   :  { %1215 = vrot.lane.b32.xlu1 %v1213_v61, %s1940_s16  ;;  %v501_v61 = vcombine.high %v500_v17, %v500_v17 }
0x12eb   :  { %v1216_v63 = vpop.permute.xlu1 %1215 }
0x12ec   :  { %v1218_v0 = vadd.f32 %v1216_v63, %v2095_v26 }
0x12ee   :  { %1885 = vtanh.f32 %v1218_v0 }
0x12fb   :  { %v1886_v32 = vpop.eup %1885 }
0x12fc   :  { %1222 = vrot.lane.b32.xlu0 %v1886_v32, %s1942_s18  ;;  %v515_v32 = vrot.slane %v501_v61, %v2241_v31 }
0x136e   :  { %v1223_v3 = vpop.permute.xlu0 %1222 }
0x136f   :  { %v1225_v5 = vmul.f32 %v1223_v3, %v1220_v1  ;;  %v517_v3 = vcombine.high %v515_v32, %v515_v32 }
0x1371   :  { %v2230_v7 = vadd.f32 %v1228_v4, %v1225_v5  ;;  %v651_v4 = vcombine.high %v650_v40, %v650_v40  ;;  %v799_v5 = vcombine.high %v798_v6, %v798_v6 }
0x1373   :  { %v1270_v10 = vrot.slane %v2230_v7, 4  ;;  %v1231_v47 = vcombine.high %v2230_v7, %v2230_v7  ;;  %v1374_v9 = vrot.slane %v2230_v7, 6 }
0x1375   :  { %1271 = vrot.lane.b32.xlu1 %v1270_v10, %s1942_s18  ;;  %v1238_v46 = vrot.slane %v1231_v47, %v2241_v31 }
0x1377   :  { %v1246_v54 = vrot.slane %v1238_v46, %v2241_v31 }
0x1379   :  { %v1257_v55 = vrot.slane %v1246_v54, %v2249_v34 }
0x13e7   :  { %v1272_v11 = vpop.permute.xlu1 %1271 }
0x13e8   :  { %1809 = vmatmul.mubr.msk.f32.vlgmr.msra.gmra.mxu0 %vm56_vm0, %v1272_v11  ;;  %v525_v11 = vrot.slane %v517_v3, %v2249_v34 }
0x13e9   :  { %1830 = vmatprep.mubr.msk.f32.mxu0 %vm1939_vm3, %v1938_v8 }
0x14a8   :  { %v1341_v12 = vpop.f32.mrf.mxu0 }
0x14a9   :  { %v1355_v13 = vadd.f32 %v1341_v12, %v2097_v28  ;;  %v1346_v20 = vrot.slane %v1341_v12, 2  ;;  %v353_v28 = vrot.slane %v2107_v48, %v2241_v31  ;;  %v508_v48 = vrot.slane %v500_v17, %v2241_v31 }
0x14aa   :  { %v1810_v14 = vpop.f32.mrf.mxu0  ;;  %v665_v12 = vrot.slane %v651_v4, %v2241_v31 }
0x14ab   :  { %v1357_v15 = vrot.slane %v1355_v13, 2  ;;  %v1348_v21 = vadd.f32 %v1346_v20, %v2095_v26  ;;  %v361_v35 = vrot.slane %v353_v28, %v2241_v31  ;;  %v516_v39 = vcombine.high %v508_v48, %v508_v48 }
0x14ac   :  { %v354_v60 = vcombine.high %v353_v28, %v353_v28  ;;  %v813_v13 = vrot.slane %v799_v5, %v2241_v31  ;;  %v1239_v28 = vcombine.high %v1238_v46, %v1238_v46 }
0x14ad   :  { %1358 = vrot.lane.b32.xlu0 %v1357_v15, %s1940_s16  ;;  %v1641_v22 = vmul.f32 -1.442695, %v1348_v21  ;;  %v372_v37 = vrot.slane %v361_v35, %v2249_v34  ;;  %v521_v38 = vrot.slane %v516_v39, %v2249_v34  ;;  %v673_v15 = vrot.slane %v665_v12, %v2249_v34 }
0x14ae   :  { %v368_v0 = vrot.slane %v354_v60, %v2241_v31  ;;  %v815_v20 = vcombine.high %v813_v13, %v813_v13  ;;  %v943_v21 = vcombine.high %v942_v42, %v942_v42 }
0x14af   :  { %1887 = vpow2.f32 %v1641_v22  ;;  %v1089_v22 = vcombine.high %v1088_v43, %v1088_v43 }
0x14b0   :  { %v957_v27 = vrot.slane %v943_v21, %v2241_v31 }
0x14b1   :  { %v1103_v16 = vrot.slane %v1089_v22, %v2241_v31 }
0x14b2   :  { %v965_v29 = vrot.slane %v957_v27, %v2249_v34 }
0x14b3   :  { %v1105_v30 = vcombine.high %v1103_v16, %v1103_v16 }
0x14b5   :  { %v1113_v17 = vrot.slane %v1105_v30, %v2249_v34 }
0x14bc   :  { %v1888_v23 = vpop.eup %1887 }
0x14bd   :  { %v1352_v25 = vadd.f32 1.0, %v1888_v23 }
0x14bf   :  { %1889 = vrcp.f32 %v1352_v25  ;;  %v823_v25 = vrot.slane %v815_v20, %v2249_v34 }
0x14cc   :  { %v2247_v33 = vpop.eup %1889 }
0x14cd   :  { %v1368_v36 = vsub.f32 1.0, %v2247_v33  ;;  %v1376_v48 = vmul.f32 %v2247_v33, %v1374_v9 }
0x151f   :  { %v1359_v18 = vpop.permute.xlu0 %1358 }
0x1520   :  { %v1361_v19 = vmul.f32 %v2247_v33, %v1359_v18  ;;  %v1253_v18 = vrot.slane %v1239_v28, %v2241_v31  ;;  %v1426_v33 = vld [vmem:[%s2375_s7 + $0x8] sm:$0xff] }
0x1522   :  { %1363 = vrot.lane.b32.xlu1 %v1361_v19, %s1940_s16  ;;  %v1261_v35 = vrot.slane %v1253_v18, %v2249_v34 }
0x1526   :  { %377 = vrot.lane.b32.xlu1 %v372_v37, %s1942_s18  ;;  %v1428_v37 = vld [vmem:[%s2375_s7 + $0x18] sm:$0xff] }
0x1527   :  { %1812 = vmatpush3.msra.mxu1 %v1428_v37  ;;  %1823 = vmatpush3.msra.mxu0 %v1428_v37 }
0x1528   :  { %1813 = vmatprep.subr.mxu1 %v1938_v8  ;;  %1824 = vmatprep.subr.mxu0 %v1938_v8 }
0x152a   :  { %526 = vrot.lane.b32.xlu1 %v521_v38, %s1942_s18  ;;  %v1427_v38 = vld [vmem:[%s2375_s7 + $0x10] sm:$0xff]  ;;  %s1944_s7 = smov [#allocation5]  }
0x152b   :  { %1814 = vmatpush3.msra.mxu1 %v1427_v38  ;;  %1825 = vmatpush3.msra.mxu0 %v1427_v38  ;;  %s1606_s0 = sshll.u32 %s1944_s7, 4  ;;  %s1607_s0 = int_to_ptr.vmem [resolvable:$true] %s1606_s0 }
0x152c   :  { %1815 = vmatprep.subr.mxu1 %v1938_v8  ;;  %1826 = vmatprep.subr.mxu0 %v1938_v8  ;;  %s1893_s2 = scalar_lea.vmem %s1607_s0, 32  ;;  %p1898_p1 = scmp.lt.s32.totalorder %s1607_s0, %s1607_s0 }
0x152d   :  { %1816 = vmatpush3.msra.mxu1 %v1426_v33  ;;  %1827 = vmatpush3.msra.mxu0 %v1426_v33  ;;  %p1894_p0 = scmp.ne.s32.totalorder %s1607_s0, %s1893_s2  ;;  %p1899_p2 = scmp.lt.s32.totalorder %s1893_s2, %s1893_s2 }
0x152e   :  { %674 = vrot.lane.b32.xlu1 %v669_v44, %s1942_s18  ;;  %1817 = vmatprep.subr.mxu1 %v1938_v8 }
0x152f   :  { %1828 = vmatprep.subr.mxu0 %v1938_v8  ;;  %1818 = vmatpush3.msra.mxu1 %v1425_v41  ;;  %p1900_p3 = por %p1899_p2, %p1898_p1 }
0x1530   :  { %1829 = vmatpush3.msra.mxu0 %v1425_v41 }
0x1531   :  { %p1901_p4 = pnand %p1900_p3, %p1894_p0 }
0x1532   :  { %824 = vrot.lane.b32.xlu1 %v819_v49, %s1942_s18 }
0x1536   :  { %966 = vrot.lane.b32.xlu1 %v961_v24, %s1942_s18 }
0x153a   :  { %1114 = vrot.lane.b32.xlu1 %v1109_v53, %s1942_s18 }
0x153e   :  { %1262 = vrot.lane.b32.xlu1 %v1257_v55, %s1942_s18 }
0x1594   :  { %v1364_v56 = vpop.permute.xlu1 %1363 }
0x1595   :  { %v1366_v57 = vadd.f32 %v1364_v56, %v2095_v26  ;;  %v376_v26 = vrot.slane %v368_v0, %v2249_v34 }
0x1597   :  { %1891 = vtanh.f32 %v1366_v57 }
0x1598   :  { %v378_v58 = vpop.permute.xlu1 %377 }
0x1599   :  { %384 = vst.msk [vmem:[#allocation2] sm:$0x1] %vm383_vm5, %v378_v58 }
0x159c   :  { %v527_v59 = vpop.permute.xlu1 %526 }
0x159d   :  { %532 = vst.msk [vmem:[#allocation2 + $0x1] sm:$0x1] %vm383_vm5, %v527_v59 }
0x15a0   :  { %v675_v63 = vpop.permute.xlu1 %674 }
0x15a1   :  { %680 = vst.msk [vmem:[#allocation2 + $0x2] sm:$0x1] %vm383_vm5, %v675_v63 }
0x15a4   :  { %v1892_v1 = vpop.eup %1891  ;;  %v825_v2 = vpop.permute.xlu1 %824 }
0x15a5   :  { %830 = vst.msk [vmem:[#allocation2 + $0x3] sm:$0x1] %vm383_vm5, %v825_v2  ;;  %1370 = vrot.lane.b32.xlu0 %v1892_v1, %s1942_s18 }
0x15a8   :  { %v967_v10 = vpop.permute.xlu1 %966 }
0x15a9   :  { %972 = vst.msk [vmem:[#allocation2 + $0x4] sm:$0x1] %vm383_vm5, %v967_v10  ;;  %379 = vrot.lane.b32.xlu0 %v376_v26, %s1942_s18 }
0x15ac   :  { %v1115_v14 = vpop.permute.xlu1 %1114 }
0x15ad   :  { %1120 = vst.msk [vmem:[#allocation2 + $0x5] sm:$0x1] %vm383_vm5, %v1115_v14  ;;  %528 = vrot.lane.b32.xlu0 %v525_v11, %s1942_s18 }
0x15b0   :  { %v1263_v23 = vpop.permute.xlu1 %1262 }
0x15b1   :  { %1268 = vst.msk [vmem:[#allocation2 + $0x6] sm:$0x1] %vm383_vm5, %v1263_v23  ;;  %676 = vrot.lane.b32.xlu0 %v673_v15, %s1942_s18 }
0x15b5   :  { %826 = vrot.lane.b32.xlu0 %v823_v25, %s1942_s18 }
0x15b9   :  { %968 = vrot.lane.b32.xlu0 %v965_v29, %s1942_s18 }
0x15bd   :  { %1116 = vrot.lane.b32.xlu0 %v1113_v17, %s1942_s18 }
0x15c1   :  { %1264 = vrot.lane.b32.xlu0 %v1261_v35, %s1942_s18 }
0x1617   :  { %v1371_v19 = vpop.permute.xlu0 %1370 }
0x1618   :  { %v1373_v6 = vmul.f32 %v1371_v19, %v1368_v36 }
0x161a   :  { %v1377_v39 = vadd.f32 %v1376_v48, %v1373_v6 }
0x161b   :  { %v380_v40 = vpop.permute.xlu0 %379 }
0x161c   :  { %v1379_v7 = vcombine.high %v1377_v39, %v1377_v39  ;;  %385 = vst.msk [vmem:[#allocation2 + $0x8] sm:$0x1] %vm383_vm5, %v380_v40 }
0x161e   :  { %v1386_v62 = vrot.slane %v1379_v7, %v2241_v31 }
0x161f   :  { %v529_v42 = vpop.permute.xlu0 %528 }
0x1620   :  { %533 = vst.msk [vmem:[#allocation2 + $0x9] sm:$0x1] %vm383_vm5, %v529_v42  ;;  %v1394_v43 = vrot.slane %v1386_v62, %v2241_v31  ;;  %v1387_v44 = vcombine.high %v1386_v62, %v1386_v62 }
0x1622   :  { %v1402_v45 = vcombine.high %v1394_v43, %v1394_v43  ;;  %v1401_v47 = vrot.slane %v1387_v44, %v2241_v31 }
0x1623   :  { %v677_v49 = vpop.permute.xlu0 %676 }
0x1624   :  { %681 = vst.msk [vmem:[#allocation2 + $0xa] sm:$0x1] %vm383_vm5, %v677_v49  ;;  %v1407_v50 = vrot.slane %v1402_v45, %v2249_v34  ;;  %v1403_v51 = vcombine.high %v1401_v47, %v1401_v47 }
0x1626   :  { %1412 = vrot.lane.b32.xlu1 %v1407_v50, %s1942_s18  ;;  %v1411_v8 = vrot.slane %v1403_v51, %v2249_v34 }
0x1627   :  { %v827_v24 = vpop.permute.xlu0 %826 }
0x1628   :  { %831 = vst.msk [vmem:[#allocation2 + $0xb] sm:$0x1] %vm383_vm5, %v827_v24  ;;  %1414 = vrot.lane.b32.xlu0 %v1411_v8, %s1942_s18 }
0x162a   :  { %1420 = vrot.lane.b32.xlu1 %v1377_v39, %s1942_s18 }
0x162b   :  { %v969_v52 = vpop.permute.xlu0 %968 }
0x162c   :  { %973 = vst.msk [vmem:[#allocation2 + $0xc] sm:$0x1] %vm383_vm5, %v969_v52 }
0x162f   :  { %v1117_v31 = vpop.permute.xlu0 %1116 }
0x1630   :  { %1121 = vst.msk [vmem:[#allocation2 + $0xd] sm:$0x1] %vm383_vm5, %v1117_v31 }
0x1633   :  { %v1265_v46 = vpop.permute.xlu0 %1264 }
0x1634   :  { %1269 = vst.msk [vmem:[#allocation2 + $0xe] sm:$0x1] %vm383_vm5, %v1265_v46 }
0x1698   :  { %v1413_v53 = vpop.permute.xlu1 %1412 }
0x1699   :  { %1418 = vst.msk [vmem:[#allocation2 + $0x7] sm:$0x1] %vm383_vm5, %v1413_v53 }
0x169a   :  { %v1415_v34 = vpop.permute.xlu0 %1414 }
0x169b   :  { %1419 = vst.msk [vmem:[#allocation2 + $0xf] sm:$0x1] %vm383_vm5, %v1415_v34 }
0x169c   :  { %v1421_v54 = vpop.permute.xlu1 %1420 }
0x169d   :  { %1424 = vst.msk [vmem:[#allocation5 - $0x6] sm:$0xc0] %vm1423_vm6, %v1421_v54 }
0x16a0   :  { %v1430_v55 = vld [vmem:[#allocation2] sm:$0xff] }
0x16a1   :  { %1820 = vmatmul.mubr.msk.f32.vlgmr.msra.gmra.mxu1 %vm56_vm0, %v1430_v55 }
0x16a2   :  { %v1512_v56 = vld [vmem:[#allocation2 + $0x8] sm:$0xff] }
0x16a3   :  { %1831 = vmatmul.mubr.msk.f32.vlgmr.msra.gmra.mxu0 %vm56_vm0, %v1512_v56 }
0x16a4   :  { %1904 = shalt.err (!%p1901_p4)
}
0x16a5   :  { %1609 = dma.vmem_to_hbm [thread:$0]  %s1607_s0, 32, %s2378_s10, [#allocation6]   ;;  %v1642_v57 = vld [vmem:[%s2376_s8] ss:$0 sm:$0xff] }
0x16a6   :  { %s1945_s3 = smov [#allocation3]  }
0x16a7   :  { %s1593_s11 = sshll.u32 %s1945_s3, 4  ;;  %s1594_s11 = int_to_ptr.vmem [resolvable:$true] %s1593_s11 }
0x16a8   :  { %s1913_s12 = scalar_lea.vmem %s1594_s11, 256  ;;  %p1918_p6 = scmp.lt.s32.totalorder %s1594_s11, %s1594_s11 }
0x16a9   :  { %p1914_p5 = scmp.ne.s32.totalorder %s1594_s11, %s1913_s12  ;;  %p1919_p7 = scmp.lt.s32.totalorder %s1913_s12, %s1913_s12 }
0x16ab   :  { %p1920_p8 = por %p1919_p7, %p1918_p6 }
0x16ad   :  { %p1921_p9 = pnand %p1920_p8, %p1914_p5 }
0x1761   :  { %v1506_v58 = vpop.f32.mrf.mxu1 }
0x1762   :  { %v1507_v59 = vadd.f32 %v1642_v57, %v1506_v58 }
0x1763   :  { %v1821_v60 = vpop.f32.mrf.mxu1  ;;  %v1582_v61 = vpop.f32.mrf.mxu0 }
0x1764   :  { %1510 = vst.msk [vmem:[#allocation3] sm:$0xff] %vm56_vm0, %v1507_v59  ;;  %v1583_v63 = vadd.f32 %v1642_v57, %v1582_v61 }
0x1765   :  { %v1832_v0 = vpop.f32.mrf.mxu0 }
0x1766   :  { %1587 = vst.msk [vmem:[#allocation3 + $0x8] sm:$0xff] %vm56_vm0, %v1583_v63 }
0x1767   :  { %1924 = shalt.err (!%p1921_p9)
}
0x1768   :  { %s1946_s8 = smov 128   ;;  %s1947_s10 = smov 8  }
0x1769   :  { %1599 = dma.vmem_to_hbm [thread:$0]  %s1594_s11, 256, %s2377_s9, [#allocation4], %s1946_s8, %s1946_s8, %s1947_s10  }
0x176a   :  { %1933 = dma.done.wait [#allocation4], 256  }
0x176b   :  { %1934 = vsyncadd [#allocation4], 4294967040 }
0x176c   :  { %1935 = dma.done.wait [#allocation6], 32  }
0x176d   :  { %1936 = vsyncadd [#allocation6], 4294967264 }
0x176e   :  { %1616 = vsyncpa [#allocation4], 1 }
0x176f   :  { %1617 = vsyncpa [#allocation6], 1 }

</bundles_post_ra>
